<compile_context>
chip_gen: v6e
topology: v6e:2x2x1
jax: 0.10.0
libtpu: 0.0.40
codegen_flags: <defaults>
</compile_context>

<pallas_src>
import functools

import jax
import jax.numpy as jnp
from jax.experimental import pallas as pl
from jax.experimental.pallas import tpu as pltpu

_LANE = 128
_MIB = 1024 * 1024


def _vmem_capacity_bytes():
    """Physical per-core VMEM; conservative 64 MiB (v7x) fallback."""
    try:
        info = pltpu.get_tpu_info()
        cap = int(getattr(info, "vmem_capacity_bytes", 0) or 0)
        if cap > 0:
            return cap
    except Exception:
        pass
    return 64 * _MIB


def _contrastive_loss_kernel(x0_ref, x1_ref, y_ref, part_ref, *,
                             margin, batch, block_rows, ragged):
    """One batch tile: (TB, D) pair + lane-dense (TB//128, 128) labels ->
    (8, 128) partial-sum slab (value at [0, 0], rest zero)."""
    g_rows = block_rows // _LANE

    x0 = x0_ref[...].astype(jnp.float32)            # (TB, D) f32
    x1 = x1_ref[...].astype(jnp.float32)
    diff = x0 - x1
    sq = diff * diff                                 # (TB, D) f32

    # Split only the (sublane-)major axis: a free relayout.  All per-row
    # quantities below are lane-dense (TB//128, 128) instead of a lane-sparse
    # (TB, 1) column, so the sqrt/clamp/weighting epilogue uses full vregs.
    d2 = jnp.sum(sq.reshape(g_rows, _LANE, sq.shape[1]), axis=-1)   # (G, 128)
    dist = jnp.sqrt(d2)
    clamped = jnp.maximum(margin - dist, 0.0)        # torch.clamp(min=0)

    y = y_ref[0]                                     # (G, 128) f32, lane-dense
    loss = y * d2 + (1.0 - y) * (clamped * clamped)

    if ragged:
        # Only emitted when num_blocks*TB != batch: drops wrapper-padded and
        # Pallas OOB rows.  Kept as a select (never a multiply) so garbage
        # NaN/Inf from uninitialized rows cannot propagate.
        i = pl.program_id(0)
        row = (i * block_rows
               + jax.lax.broadcasted_iota(jnp.int32, (g_rows, _LANE), 0) * _LANE
               + jax.lax.broadcasted_iota(jnp.int32, (g_rows, _LANE), 1))
        loss = jnp.where(row < batch, loss, 0.0)

    # (1, 1) partial sum; two keepdims reduces keep everything rank-2.
    psum = jnp.sum(jnp.sum(loss, axis=0, keepdims=True), axis=1, keepdims=True)

    # Lane-dense output slab: zero fill + single-element store.
    part_ref[...] = jnp.zeros_like(part_ref)
    part_ref[0:1, 0:1] = psum


def contrastive_loss(x0, x1, y, margin=1.25):
    """Pallas TPU contrastive loss.

    x0, x1: [B, D] float arrays (any float dtype; cast to f32 in-kernel),
    y: [B] labels (0/1). Returns scalar f32.
    """
    assert x0.ndim == 2 and x1.ndim == 2 and y.ndim == 1
    assert x0.shape == x1.shape
    assert x0.shape[0] == y.shape[0] and x0.shape[0] > 0

    orig_batch, D = x0.shape
    itemsize = x0.dtype.itemsize
    d_pad = pl.cdiv(D, _LANE) * _LANE          # lane-padded feature width in VMEM

    # Tiny batches: pad the pair up to one 128-row tile (negligible copy at
    # this size; large batches are never copied).  Padded rows are removed by
    # the in-kernel `ragged` select.
    rows = orig_batch
    if rows < _LANE:
        x0 = jnp.pad(x0, ((0, _LANE - rows), (0, 0)))
        x1 = jnp.pad(x1, ((0, _LANE - rows), (0, 0)))
        rows = _LANE

    # ---- padding-aware, generation-aware tile sizing -----------------------
    vmem_cap = _vmem_capacity_bytes()
    # ~85% of physical: ~54 MiB on v7x (64 MiB/TC); capped ~112 MiB on
    # v5e/v6e (128 MiB) so Mosaic keeps internal-scratch headroom.
    usable = min(int(vmem_cap * 0.85), 112 * _MIB)

    bytes_per_row = (
        2 * 2 * d_pad * itemsize   # x0/x1 tiles, double-buffered, lane-padded
        + 3 * d_pad * 4            # in-kernel f32 upcast / diff / square temps
        + 14 * 4                   # lane-dense per-row f32 intermediates + y buffers
    )
    fixed_bytes = 2 * 8 * _LANE * 4 + _MIB     # output slabs + slack

    tb = (usable - fixed_bytes) // bytes_per_row
    tb = max(_LANE, (tb // _LANE) * _LANE)     # multiple of 128 rows (dense epilogue)
    tb = min(tb, (rows // _LANE) * _LANE)      # block rows never exceed the array
    # v7x megacore: keep >= 2 grid steps when the batch allows it so both
    # TensorCores stream half the batch each.
    if pl.cdiv(rows, tb) == 1 and tb >= 2 * _LANE:
        tb = pl.cdiv(pl.cdiv(rows, 2), _LANE) * _LANE
    num_blocks = pl.cdiv(rows, tb)
    g_rows = tb // _LANE

    ragged = (num_blocks * tb) != orig_batch

    # Lane-dense labels: pad to num_blocks*tb rows and view as
    # (nb, tb//128, 128) -> one contiguous DMA per block and ~tb*4 B of VMEM
    # instead of the tb*512 B a lane-sparse (tb, 1) column block would cost.
    y_f = y.astype(jnp.float32)
    y_pad = num_blocks * tb - orig_batch
    if y_pad:
        y_f = jnp.pad(y_f, (0, y_pad))
    y3 = y_f.reshape(num_blocks, g_rows, _LANE)

    kernel = functools.partial(
        _contrastive_loss_kernel, margin=float(margin), batch=int(orig_batch),
        block_rows=int(tb), ragged=bool(ragged))

    vmem_need = tb * bytes_per_row + fixed_bytes
    vmem_limit = int(max(32 * _MIB, min(vmem_need + 4 * _MIB, vmem_cap - 4 * _MIB)))

    cost = pl.CostEstimate(
        flops=int(3 * orig_batch * D + 8 * orig_batch),
        transcendentals=int(orig_batch),
        bytes_accessed=int(2 * rows * D * itemsize + num_blocks * tb * 4
                           + num_blocks * 8 * _LANE * 4),
    )

    partials = pl.pallas_call(
        kernel,
        out_shape=jax.ShapeDtypeStruct((num_blocks * 8, _LANE), jnp.float32),
        grid=(num_blocks,),
        in_specs=[
            pl.BlockSpec((tb, D), lambda i: (i, 0)),
            pl.BlockSpec((tb, D), lambda i: (i, 0)),
            pl.BlockSpec((1, g_rows, _LANE), lambda i: (i, 0, 0)),
        ],
        out_specs=pl.BlockSpec((8, _LANE), lambda i: (i, 0)),
        compiler_params=pltpu.CompilerParams(
            dimension_semantics=("parallel",),
            vmem_limit_bytes=vmem_limit,
        ),
        cost_estimate=cost,
    )(x0, x1, y3)

    # Tiny finalize in the wrapper: sum of per-block partials, normalized.
    return jnp.sum(partials) * (1.0 / (2.0 * orig_batch))


def _reference(x0, x1, y, margin=1.25):
    diff = x0.astype(jnp.float32) - x1.astype(jnp.float32)
    dist_sq = jnp.sum(diff * diff, axis=1)
    dist = jnp.sqrt(dist_sq)
    clamped = jnp.maximum(margin - dist, 0.0)
    yf = y.astype(jnp.float32)
    loss = yf * dist_sq + (1.0 - yf) * clamped * clamped
    return jnp.sum(loss) / 2.0 / x0.shape[0]


if __name__ == "__main__":
    key = jax.random.PRNGKey(0)
    k0, k1, ky = jax.random.split(key, 3)

    B, D = 8, 32  # small 2-D embedding pair, consistent with the module spec
    x0 = jax.random.normal(k0, (B, D), dtype=jnp.float32)
    x1 = jax.random.normal(k1, (B, D), dtype=jnp.float32)
    y = jax.random.bernoulli(ky, p=0.5, shape=(B,)).astype(jnp.float32)

    out = contrastive_loss(x0, x1, y, margin=1.25)
    out = jax.block_until_ready(out)

    ref = _reference(x0, x1, y, margin=1.25)
    assert jnp.allclose(out, ref, rtol=1e-5, atol=1e-5), (out, ref)
    print("KERNEL_OK")
</pallas_src>

<mosaic_0001>
module attributes {stable_mosaic.version = 11 : i64} {
  func.func @_contrastive_loss_kernel(%arg0: i32, %arg1: memref<128x32xf32, #tpu.memory_space<vmem>>, %arg2: memref<128x32xf32, #tpu.memory_space<vmem>>, %arg3: memref<1x1x128xf32, #tpu.memory_space<vmem>>, %arg4: memref<8x128xf32, #tpu.memory_space<vmem>>) attributes {dimension_semantics = [#tpu.dimension_semantics<parallel>], iteration_bounds = array<i64: 1>, scalar_prefetch = 0 : i64, scratch_operands = 0 : i64, tpu.core_type = #tpu.core_type<tc>, window_params = [{transform_indices = @transform_0, window_bounds = array<i64: 128, 32>}, {transform_indices = @transform_1, window_bounds = array<i64: 128, 32>}, {transform_indices = @transform_2, window_bounds = array<i64: 1, 1, 128>}, {transform_indices = @transform_3, window_bounds = array<i64: 8, 128>}]} {
    %c0 = arith.constant 0 : index
    %c0_0 = arith.constant 0 : index
    %0 = vector.load %arg1[%c0, %c0_0] : memref<128x32xf32, #tpu.memory_space<vmem>>, vector<128x32xf32>
    %c0_1 = arith.constant 0 : index
    %c0_2 = arith.constant 0 : index
    %1 = vector.load %arg2[%c0_1, %c0_2] : memref<128x32xf32, #tpu.memory_space<vmem>>, vector<128x32xf32>
    %2 = arith.subf %0, %1 : vector<128x32xf32>
    %3 = arith.mulf %2, %2 : vector<128x32xf32>
    %4 = vector.shape_cast %3 : vector<128x32xf32> to vector<1x128x32xf32>
    %cst = arith.constant dense<0.000000e+00> : vector<1x128xf32>
    %5 = vector.multi_reduction <add>, %4, %cst [2] : vector<1x128x32xf32> to vector<1x128xf32>
    %6 = math.sqrt %5 : vector<1x128xf32>
    %cst_3 = arith.constant 1.250000e+00 : f32
    %7 = vector.broadcast %cst_3 : f32 to vector<1x128xf32>
    %8 = arith.subf %7, %6 : vector<1x128xf32>
    %cst_4 = arith.constant 0.000000e+00 : f32
    %9 = vector.broadcast %cst_4 : f32 to vector<1x128xf32>
    %10 = arith.maximumf %8, %9 : vector<1x128xf32>
    %c0_5 = arith.constant 0 : index
    %c0_6 = arith.constant 0 : index
    %c0_7 = arith.constant 0 : index
    %11 = vector.load %arg3[%c0_5, %c0_6, %c0_7] : memref<1x1x128xf32, #tpu.memory_space<vmem>>, vector<1x1x128xf32>
    %12 = vector.shape_cast %11 : vector<1x1x128xf32> to vector<1x128xf32>
    %13 = arith.mulf %12, %5 : vector<1x128xf32>
    %cst_8 = arith.constant 1.000000e+00 : f32
    %14 = vector.broadcast %cst_8 : f32 to vector<1x128xf32>
    %15 = arith.subf %14, %12 : vector<1x128xf32>
    %16 = arith.mulf %10, %10 : vector<1x128xf32>
    %17 = arith.mulf %15, %16 : vector<1x128xf32>
    %18 = arith.addf %13, %17 : vector<1x128xf32>
    %c128_i32 = arith.constant 128 : i32
    %19 = arith.muli %arg0, %c128_i32 : i32
    %20 = tpu.iota {dimensions = array<i32: 0>} : vector<1x128xi32>
    %c128_i32_9 = arith.constant 128 : i32
    %21 = vector.broadcast %c128_i32_9 : i32 to vector<1x128xi32>
    %22 = arith.muli %20, %21 : vector<1x128xi32>
    %23 = vector.broadcast %19 : i32 to vector<1x128xi32>
    %24 = arith.addi %23, %22 : vector<1x128xi32>
    %25 = tpu.iota {dimensions = array<i32: 1>} : vector<1x128xi32>
    %26 = arith.addi %24, %25 : vector<1x128xi32>
    %c8_i32 = arith.constant 8 : i32
    %27 = vector.broadcast %c8_i32 : i32 to vector<1x128xi32>
    %28 = arith.cmpi slt, %26, %27 : vector<1x128xi32>
    %cst_10 = arith.constant 0.000000e+00 : f32
    %29 = vector.broadcast %cst_10 : f32 to vector<1x128xf32>
    %30 = arith.select %28, %18, %29 : vector<1x128xi1>, vector<1x128xf32>
    %cst_11 = arith.constant dense<0.000000e+00> : vector<128xf32>
    %31 = vector.multi_reduction <add>, %30, %cst_11 [0] : vector<1x128xf32> to vector<128xf32>
    %32 = vector.shape_cast %31 : vector<128xf32> to vector<1x128xf32>
    %cst_12 = arith.constant dense<0.000000e+00> : vector<1xf32>
    %33 = vector.multi_reduction <add>, %32, %cst_12 [1] : vector<1x128xf32> to vector<1xf32>
    %34 = vector.shape_cast %33 : vector<1xf32> to vector<1x1xf32>
    %cst_13 = arith.constant 0.000000e+00 : f32
    %35 = vector.broadcast %cst_13 : f32 to vector<8x128xf32>
    %c0_14 = arith.constant 0 : index
    %c0_15 = arith.constant 0 : index
    %36 = vector.load %arg4[%c0_14, %c0_15] : memref<8x128xf32, #tpu.memory_space<vmem>>, vector<8x128xf32>
    tpu.vector_store %arg4[%c0_14, %c0_15], %35 {strides = array<i32>} : memref<8x128xf32, #tpu.memory_space<vmem>>, vector<8x128xf32>,
    %c0_16 = arith.constant 0 : index
    %c0_17 = arith.constant 0 : index
    %37 = vector.load %arg4[%c0_16, %c0_17] : memref<8x128xf32, #tpu.memory_space<vmem>>, vector<1x1xf32>
    tpu.vector_store %arg4[%c0_16, %c0_17], %34 {strides = array<i32>} : memref<8x128xf32, #tpu.memory_space<vmem>>, vector<1x1xf32>,
    return
  }
  func.func @transform_0(%arg0: i32) -> (i32, i32) {
    %c0_i32 = arith.constant 0 : i32
    %c0_i32_0 = arith.constant 0 : i32
    return %arg0, %c0_i32 : i32, i32
  }
  func.func @transform_1(%arg0: i32) -> (i32, i32) {
    %c0_i32 = arith.constant 0 : i32
    %c0_i32_0 = arith.constant 0 : i32
    return %arg0, %c0_i32 : i32, i32
  }
  func.func @transform_2(%arg0: i32) -> (i32, i32, i32) {
    %c0_i32 = arith.constant 0 : i32
    %c0_i32_0 = arith.constant 0 : i32
    %c0_i32_1 = arith.constant 0 : i32
    return %arg0, %c0_i32, %c0_i32_0 : i32, i32, i32
  }
  func.func @transform_3(%arg0: i32) -> (i32, i32) {
    %c0_i32 = arith.constant 0 : i32
    %c0_i32_0 = arith.constant 0 : i32
    return %arg0, %c0_i32 : i32, i32
  }
}

</mosaic_0001>

<bundles_post_ra>
// kernel: tpu_custom_call.1
= control target key start
LH: loop header
LB: loop body
LE: loop exit
PB: predicated region body
PF: predicated region fallthrough
CT: control target
= control target key end

     0   :  { %vm79_vm0 = vcmask 261120   ;;  %s4380_s0 = inlined_call_operand.vmem [shape: f32[128,32], index: 0, kind: input, shape index: {}]   ;;  %s4381_s1 = inlined_call_operand.vmem [shape: f32[128,32], index: 1, kind: input, shape index: {}]   ;;  %s4382_s2 = inlined_call_operand.vmem [shape: f32[1,1,128], index: 2, kind: input, shape index: {}]   ;;  %s4383_s3 = inlined_call_operand.hbm [shape: f32[8,128], index: 3, kind: output, shape index: {}]  }
   0x1   :  { %v17_v0 = vld [vmem:[%s4380_s0 + $0x10] sm:$0xff]  ;;  %v15_v2 = vld [vmem:[%s4380_s0] sm:$0xff]  ;;  %v18_v5 = vld [vmem:[%s4380_s0 + $0x18] sm:$0xff] }
   0x2   :  { %v33_v1 = vld [vmem:[%s4381_s1 + $0x10] sm:$0xff]  ;;  %v31_v4 = vld [vmem:[%s4381_s1] sm:$0xff]  ;;  %v34_v6 = vld [vmem:[%s4381_s1 + $0x18] sm:$0xff] }
   0x3   :  { %v49_v3 = vsub.f32 %v17_v0, %v33_v1  ;;  %v47_v7 = vsub.f32 %v15_v2, %v31_v4  ;;  %v50_v8 = vsub.f32 %v18_v5, %v34_v6  ;;  %v16_v9 = vld [vmem:[%s4380_s0 + $0x8] sm:$0xff]  ;;  %v19_v15 = vld [vmem:[%s4380_s0 + $0x20] sm:$0xff]  ;;  %v22_v21 = vld [vmem:[%s4380_s0 + $0x38] sm:$0xff] }
   0x4   :  { %v32_v10 = vld [vmem:[%s4381_s1 + $0x8] sm:$0xff]  ;;  %v35_v16 = vld [vmem:[%s4381_s1 + $0x20] sm:$0xff]  ;;  %v38_v22 = vld [vmem:[%s4381_s1 + $0x38] sm:$0xff] }
   0x5   :  { %v20_v11 = vld [vmem:[%s4380_s0 + $0x28] sm:$0xff]  ;;  %v65_v12 = vmul.f32 %v49_v3, %v49_v3  ;;  %v48_v13 = vsub.f32 %v16_v9, %v32_v10  ;;  %v63_v17 = vmul.f32 %v47_v7, %v47_v7  ;;  %v66_v18 = vmul.f32 %v50_v8, %v50_v8  ;;  %v21_v25 = vld [vmem:[%s4380_s0 + $0x30] sm:$0xff]  ;;  %v23_v36 = vld [vmem:[%s4380_s0 + $0x40] sm:$0xff] }
   0x6   :  { %v36_v14 = vld [vmem:[%s4381_s1 + $0x28] sm:$0xff]  ;;  %v51_v20 = vsub.f32 %v19_v15, %v35_v16  ;;  %v37_v26 = vld [vmem:[%s4381_s1 + $0x30] sm:$0xff]  ;;  %v54_v30 = vsub.f32 %v22_v21, %v38_v22  ;;  %v39_v37 = vld [vmem:[%s4381_s1 + $0x40] sm:$0xff] }
   0x7   :  { %v52_v19 = vsub.f32 %v20_v11, %v36_v14  ;;  %v86_v23 = vsel %vm79_vm0, %v65_v12, 0.0  ;;  %v64_v24 = vmul.f32 %v48_v13, %v48_v13  ;;  %v80_v27 = vsel %vm79_vm0, %v63_v17, 0.0  ;;  %v24_v34 = vld [vmem:[%s4380_s0 + $0x48] sm:$0xff] }
   0x8   :  { %87 = vadd.xlane.f32.xlu1 %v86_v23  ;;  %81 = vadd.xlane.f32.xlu0 %v80_v27  ;;  %v89_v28 = vsel %vm79_vm0, %v66_v18, 0.0  ;;  %v67_v32 = vmul.f32 %v51_v20, %v51_v20  ;;  %v53_v33 = vsub.f32 %v21_v25, %v37_v26  ;;  %v40_v35 = vld [vmem:[%s4381_s1 + $0x48] sm:$0xff] }
   0x9   :  { %v68_v29 = vmul.f32 %v52_v19, %v52_v19  ;;  %v83_v31 = vsel %vm79_vm0, %v64_v24, 0.0 }
   0xc   :  { %90 = vadd.xlane.f32.xlu1 %v89_v28 }
   0xd   :  { %8 = vsyncpa [#allocation3], 0  ;;  %84 = vadd.xlane.f32.xlu0 %v83_v31  ;;  %v95_v38 = vsel %vm79_vm0, %v68_v29, 0.0  ;;  %v70_v39 = vmul.f32 %v54_v30, %v54_v30  ;;  %v56_v40 = vsub.f32 %v24_v34, %v40_v35  ;;  %v92_v41 = vsel %vm79_vm0, %v67_v32, 0.0  ;;  %v26_v44 = vld [vmem:[%s4380_s0 + $0x58] sm:$0xff]  ;;  %v25_v46 = vld [vmem:[%s4380_s0 + $0x50] sm:$0xff] }
   0xe   :  { %v69_v42 = vmul.f32 %v53_v33, %v53_v33  ;;  %v55_v43 = vsub.f32 %v23_v36, %v39_v37  ;;  %v42_v45 = vld [vmem:[%s4381_s1 + $0x58] sm:$0xff]  ;;  %v41_v47 = vld [vmem:[%s4381_s1 + $0x50] sm:$0xff]  ;;  %v28_v54 = vld [vmem:[%s4380_s0 + $0x68] sm:$0xff]  ;;  %v3324_v10 = vmov 0   ;;  %v4384_v17 = vlaneseq }
   0xf   :  { %v101_v48 = vsel %vm79_vm0, %v70_v39, 0.0  ;;  %v72_v49 = vmul.f32 %v56_v40, %v56_v40  ;;  %v58_v50 = vsub.f32 %v26_v44, %v42_v45  ;;  %v57_v53 = vsub.f32 %v25_v46, %v41_v47  ;;  %v44_v55 = vld [vmem:[%s4381_s1 + $0x68] sm:$0xff]  ;;  %v27_v56 = vld [vmem:[%s4380_s0 + $0x60] sm:$0xff]  ;;  %v30_v0 = vld [vmem:[%s4380_s0 + $0x78] sm:$0xff]  ;;  %3268 = vset.pattern.permute.xlu0 %v3324_v10  ;;  %3269 = vset.pattern.permute.xlu1 %v3324_v10 }
  0x10   :  { %96 = vadd.xlane.f32.xlu1 %v95_v38  ;;  %v98_v51 = vsel %vm79_vm0, %v69_v42, 0.0  ;;  %v71_v52 = vmul.f32 %v55_v43, %v55_v43  ;;  %v43_v57 = vld [vmem:[%s4381_s1 + $0x60] sm:$0xff]  ;;  %v60_v60 = vsub.f32 %v28_v54, %v44_v55  ;;  %v46_v1 = vld [vmem:[%s4381_s1 + $0x78] sm:$0xff]  ;;  %v29_v2 = vld [vmem:[%s4380_s0 + $0x70] sm:$0xff]  ;;  %v3325_v18 = vmov 1966171168  }
  0x11   :  { %93 = vadd.xlane.f32.xlu0 %v92_v41  ;;  %v107_v58 = vsel %vm79_vm0, %v72_v49, 0.0  ;;  %v74_v59 = vmul.f32 %v58_v50, %v58_v50  ;;  %v73_v62 = vmul.f32 %v57_v53, %v57_v53  ;;  %v59_v63 = vsub.f32 %v27_v56, %v43_v57  ;;  %v45_v3 = vld [vmem:[%s4381_s1 + $0x70] sm:$0xff] }
  0x12   :  { %v104_v61 = vsel %vm79_vm0, %v71_v52, 0.0  ;;  %v76_v5 = vmul.f32 %v60_v60, %v60_v60  ;;  %v62_v6 = vsub.f32 %v30_v0, %v46_v1  ;;  %v61_v9 = vsub.f32 %v29_v2, %v45_v3 }
  0x13   :  { %v113_v4 = vsel %vm79_vm0, %v74_v59, 0.0  ;;  %v110_v7 = vsel %vm79_vm0, %v73_v62, 0.0  ;;  %v75_v8 = vmul.f32 %v59_v63, %v59_v63  ;;  %v806_v19 = vunpack.c.l.s4 %v3325_v18 }
  0x14   :  { %102 = vadd.xlane.f32.xlu1 %v101_v48  ;;  %v119_v11 = vsel %vm79_vm0, %v76_v5, 0.0  ;;  %v78_v12 = vmul.f32 %v62_v6, %v62_v6  ;;  %v77_v14 = vmul.f32 %v61_v9, %v61_v9  ;;  %v3461_v20 = vshrl.u32 %v4384_v17, 7 }
  0x15   :  { %99 = vadd.xlane.f32.xlu0 %v98_v51  ;;  %v116_v13 = vsel %vm79_vm0, %v75_v8, 0.0  ;;  %v807_v21 = vunpack.c.0.s8 %v806_v19 }
  0x16   :  { %v125_v15 = vsel %vm79_vm0, %v78_v12, 0.0  ;;  %v122_v16 = vsel %vm79_vm0, %v77_v14, 0.0  ;;  %4387 = vst [vmem:[#allocation5_spill] sm:$0xff] %v3461_v20  ;;  %v3464_v22 = vsub.s32 0, %v3461_v20  ;;  %v3467_v23 = vsub.s32 1, %v3461_v20 }
  0x17   :  { %v3470_v24 = vsub.s32 2, %v3461_v20  ;;  %v3473_v25 = vsub.s32 3, %v3461_v20  ;;  %v3476_v26 = vsub.s32 4, %v3461_v20  ;;  %v3479_v27 = vsub.s32 5, %v3461_v20 }
  0x18   :  { %108 = vadd.xlane.f32.xlu1 %v107_v58  ;;  %v3482_v28 = vsub.s32 6, %v3461_v20  ;;  %v3487_v30 = vsub.s32 7, %v3461_v20  ;;  %v3490_v31 = vsub.s32 %v807_v21, %v3461_v20 }
  0x19   :  { %105 = vadd.xlane.f32.xlu0 %v104_v61 }
  0x1c   :  { %114 = vadd.xlane.f32.xlu1 %v113_v4 }
  0x1d   :  { %111 = vadd.xlane.f32.xlu0 %v110_v7 }
  0x20   :  { %120 = vadd.xlane.f32.xlu1 %v119_v11 }
  0x21   :  { %117 = vadd.xlane.f32.xlu0 %v116_v13 }
  0x24   :  { %126 = vadd.xlane.f32.xlu1 %v125_v15 }
  0x25   :  { %123 = vadd.xlane.f32.xlu0 %v122_v16 }
  0x91   :  { %v3484_v29 = vpop.xlane.xlu1 %87  ;;  %v3493_v32 = vpop.xlane.xlu0 %81 }
  0x92   :  { %3270 = vrsqrt.f32 %v3484_v29  ;;  %v356_v33 = vrot.slane %v3484_v29, %v3464_v22  ;;  %v360_v34 = vrot.slane %v3484_v29, %v3467_v23  ;;  %v364_v35 = vrot.slane %v3484_v29, %v3470_v24 }
  0x93   :  { %3272 = vrsqrt.f32 %v3493_v32  ;;  %v292_v36 = vrot.slane %v3493_v32, %v3464_v22  ;;  %v296_v37 = vrot.slane %v3493_v32, %v3467_v23  ;;  %v300_v38 = vrot.slane %v3493_v32, %v3470_v24 }
  0x94   :  { %v304_v39 = vrot.slane %v3493_v32, %v3473_v25  ;;  %v308_v40 = vrot.slane %v3493_v32, %v3476_v26  ;;  %v312_v41 = vrot.slane %v3493_v32, %v3479_v27  ;;  %v316_v42 = vrot.slane %v3493_v32, %v3482_v28 }
  0x95   :  { %v3516_v43 = vpop.xlane.xlu1 %90  ;;  %v320_v44 = vrot.slane %v3493_v32, %v3487_v30  ;;  %v801_v45 = vcombine.low %v292_v36, %v296_v37  ;;  %v368_v46 = vrot.slane %v3484_v29, %v3473_v25  ;;  %v372_v47 = vrot.slane %v3484_v29, %v3476_v26 }
  0x96   :  { %3274 = vrsqrt.f32 %v3516_v43  ;;  %v3525_v48 = vpop.xlane.xlu0 %84  ;;  %v802_v49 = vcombine.low %v300_v38, %v304_v39  ;;  %v803_v50 = vcombine.low %v308_v40, %v312_v41  ;;  %v376_v51 = vrot.slane %v3484_v29, %v3479_v27 }
  0x97   :  { %3276 = vrsqrt.f32 %v3525_v48  ;;  %v804_v52 = vcombine.low %v316_v42, %v320_v44  ;;  %v811_v53 = vrot.slane %v801_v45, %v3490_v31  ;;  %v324_v54 = vrot.slane %v3525_v48, %v3464_v22 }
  0x98   :  { %v818_v55 = vrot.slane %v802_v49, %v3490_v31  ;;  %v825_v56 = vrot.slane %v803_v50, %v3490_v31  ;;  %v328_v57 = vrot.slane %v3525_v48, %v3467_v23  ;;  %v332_v58 = vrot.slane %v3525_v48, %v3470_v24 }
  0x99   :  { %v3539_v59 = vpop.xlane.xlu1 %96  ;;  %v832_v60 = vrot.slane %v804_v52, %v3490_v31  ;;  %v336_v61 = vrot.slane %v3525_v48, %v3473_v25  ;;  %v340_v62 = vrot.slane %v3525_v48, %v3476_v26  ;;  %v344_v63 = vrot.slane %v3525_v48, %v3479_v27 }
  0x9a   :  { %3278 = vrsqrt.f32 %v3539_v59  ;;  %v3549_v0 = vpop.xlane.xlu0 %93  ;;  %v833_v1 = vcombine.low %v811_v53, %v818_v55  ;;  %v348_v2 = vrot.slane %v3525_v48, %v3482_v28  ;;  %v352_v3 = vrot.slane %v3525_v48, %v3487_v30 }
  0x9b   :  { %3280 = vrsqrt.f32 %v3549_v0  ;;  %v834_v4 = vcombine.low %v825_v56, %v832_v60  ;;  %v850_v5 = vcombine.low %v324_v54, %v328_v57  ;;  %v851_v6 = vcombine.low %v332_v58, %v336_v61 }
  0x9c   :  { %v841_v7 = vrot.slane %v833_v1, %v3490_v31  ;;  %v852_v8 = vcombine.low %v340_v62, %v344_v63  ;;  %v853_v9 = vcombine.low %v348_v2, %v352_v3  ;;  %v380_v10 = vrot.slane %v3484_v29, %v3482_v28 }
  0x9d   :  { %v3559_v11 = vpop.xlane.xlu1 %102  ;;  %v848_v12 = vrot.slane %v834_v4, %v3490_v31  ;;  %v860_v13 = vrot.slane %v850_v5, %v3490_v31  ;;  %v867_v14 = vrot.slane %v851_v6, %v3490_v31  ;;  %v384_v15 = vrot.slane %v3484_v29, %v3487_v30 }
  0x9e   :  { %3282 = vrsqrt.f32 %v3559_v11  ;;  %v3567_v16 = vpop.xlane.xlu0 %99  ;;  %v874_v18 = vrot.slane %v852_v8, %v3490_v31  ;;  %v881_v19 = vrot.slane %v853_v9, %v3490_v31  ;;  %v899_v21 = vcombine.low %v356_v33, %v360_v34 }
  0x9f   :  { %v3571_v36 = vpop.eup %3270  ;;  %3284 = vrsqrt.f32 %v3567_v16  ;;  %v849_v37 = vcombine.low %v841_v7, %v848_v12  ;;  %v882_v38 = vcombine.low %v860_v13, %v867_v14  ;;  %v900_v39 = vcombine.low %v364_v35, %v368_v46 }
  0xa0   :  { %v3574_v40 = vpop.eup %3272  ;;  %v883_v41 = vcombine.low %v874_v18, %v881_v19  ;;  %v901_v42 = vcombine.low %v372_v47, %v376_v51  ;;  %v902_v44 = vcombine.low %v380_v10, %v384_v15  ;;  %v909_v45 = vrot.slane %v899_v21, %v3490_v31 }
  0xa1   :  { %1586 = vperm.xlu0 %3268, %v849_v37   ;;  %v3577_v49 = vpop.xlane.xlu1 %108  ;;  %v890_v50 = vrot.slane %v882_v38, %v3490_v31  ;;  %v916_v33 = vrot.slane %v900_v39, %v3490_v31  ;;  %v388_v34 = vrot.slane %v3516_v43, %v3464_v22  ;;  %v392_v35 = vrot.slane %v3516_v43, %v3467_v23 }
  0xa2   :  { %3286 = vrsqrt.f32 %v3577_v49  ;;  %v3586_v46 = vpop.xlane.xlu0 %105  ;;  %v897_v47 = vrot.slane %v883_v41, %v3490_v31  ;;  %v923_v51 = vrot.slane %v901_v42, %v3490_v31  ;;  %v930_v52 = vrot.slane %v902_v44, %v3490_v31 }
  0xa3   :  { %v3591_v53 = vpop.eup %3274  ;;  %3288 = vrsqrt.f32 %v3586_v46  ;;  %v931_v54 = vcombine.low %v909_v45, %v916_v33  ;;  %v396_v55 = vrot.slane %v3516_v43, %v3470_v24  ;;  %v400_v56 = vrot.slane %v3516_v43, %v3473_v25 }
  0xa4   :  { %v3598_v57 = vpop.eup %3276  ;;  %v898_v58 = vcombine.low %v890_v50, %v897_v47  ;;  %v932_v60 = vcombine.low %v923_v51, %v930_v52  ;;  %v404_v61 = vrot.slane %v3516_v43, %v3476_v26  ;;  %v408_v62 = vrot.slane %v3516_v43, %v3479_v27 }
  0xa5   :  { %v3604_v63 = vpop.xlane.xlu1 %114  ;;  %v939_v1 = vrot.slane %v931_v54, %v3490_v31  ;;  %v412_v2 = vrot.slane %v3516_v43, %v3482_v28  ;;  %v416_v3 = vrot.slane %v3516_v43, %v3487_v30  ;;  %v948_v4 = vcombine.low %v388_v34, %v392_v35 }
  0xa6   :  { %1589 = vperm.xlu1 %3269, %v898_v58   ;;  %3290 = vrsqrt.f32 %v3604_v63  ;;  %v3612_v5 = vpop.xlane.xlu0 %111  ;;  %v946_v6 = vrot.slane %v932_v60, %v3490_v31  ;;  %v949_v7 = vcombine.low %v396_v55, %v400_v56  ;;  %v950_v8 = vcombine.low %v404_v61, %v408_v62 }
  0xa7   :  { %v3615_v9 = vpop.eup %3278  ;;  %3292 = vrsqrt.f32 %v3612_v5  ;;  %v951_v10 = vcombine.low %v412_v2, %v416_v3  ;;  %v958_v12 = vrot.slane %v948_v4, %v3490_v31  ;;  %v420_v13 = vrot.slane %v3549_v0, %v3464_v22 }
  0xa8   :  { %v3621_v14 = vpop.eup %3280  ;;  %v947_v15 = vcombine.low %v939_v1, %v946_v6  ;;  %v965_v18 = vrot.slane %v949_v7, %v3490_v31  ;;  %v972_v19 = vrot.slane %v950_v8, %v3490_v31  ;;  %v424_v21 = vrot.slane %v3549_v0, %v3467_v23 }
  0xa9   :  { %v979_v37 = vrot.slane %v951_v10, %v3490_v31  ;;  %v3628_v38 = vpop.xlane.xlu1 %120  ;;  %v428_v39 = vrot.slane %v3549_v0, %v3470_v24  ;;  %v432_v41 = vrot.slane %v3549_v0, %v3473_v25  ;;  %v436_v42 = vrot.slane %v3549_v0, %v3476_v26 }
  0xaa   :  { %1592 = vperm.xlu1 %3269, %v947_v15   ;;  %v3636_v44 = vpop.xlane.xlu0 %117  ;;  %v980_v45 = vcombine.low %v958_v12, %v965_v18  ;;  %3294 = vrsqrt.f32 %v3628_v38  ;;  %v440_v50 = vrot.slane %v3549_v0, %v3479_v27  ;;  %v444_v33 = vrot.slane %v3549_v0, %v3482_v28 }
  0xab   :  { %v3643_v34 = vpop.eup %3282  ;;  %3296 = vrsqrt.f32 %v3636_v44  ;;  %v981_v35 = vcombine.low %v972_v19, %v979_v37  ;;  %v448_v47 = vrot.slane %v3549_v0, %v3487_v30  ;;  %v997_v51 = vcombine.low %v420_v13, %v424_v21 }
  0xac   :  { %v3648_v52 = vpop.eup %3284  ;;  %v988_v54 = vrot.slane %v980_v45, %v3490_v31  ;;  %v998_v55 = vcombine.low %v428_v39, %v432_v41  ;;  %v999_v56 = vcombine.low %v436_v42, %v440_v50  ;;  %v452_v58 = vrot.slane %v3539_v59, %v3464_v22 }
  0xad   :  { %v995_v60 = vrot.slane %v981_v35, %v3490_v31  ;;  %v1000_v61 = vcombine.low %v444_v33, %v448_v47  ;;  %v1007_v62 = vrot.slane %v997_v51, %v3490_v31  ;;  %v456_v1 = vrot.slane %v3539_v59, %v3467_v23  ;;  %v3665_v8 = vpop.xlane.xlu1 %126 }
  0xae   :  { %v1014_v2 = vrot.slane %v998_v55, %v3490_v31  ;;  %v1021_v3 = vrot.slane %v999_v56, %v3490_v31  ;;  %v3659_v4 = vpop.xlane.xlu0 %123  ;;  %v460_v6 = vrot.slane %v3539_v59, %v3470_v24  ;;  %v464_v7 = vrot.slane %v3539_v59, %v3473_v25 }
  0xaf   :  { %v3667_v10 = vpop.eup %3286  ;;  %v996_v12 = vcombine.low %v988_v54, %v995_v60  ;;  %v1028_v13 = vrot.slane %v1000_v61, %v3490_v31  ;;  %3298 = vrsqrt.f32 %v3659_v4  ;;  %v468_v15 = vrot.slane %v3539_v59, %v3476_v26 }
  0xb0   :  { %v3673_v18 = vpop.eup %3288  ;;  %v1029_v19 = vcombine.low %v1007_v62, %v1014_v2  ;;  %v472_v21 = vrot.slane %v3539_v59, %v3479_v27  ;;  %v476_v37 = vrot.slane %v3539_v59, %v3482_v28  ;;  %v480_v39 = vrot.slane %v3539_v59, %v3487_v30 }
  0xb1   :  { %1595 = vperm.xlu1 %3269, %v996_v12   ;;  %v1030_v41 = vcombine.low %v1021_v3, %v1028_v13  ;;  %v1046_v42 = vcombine.low %v452_v58, %v456_v1  ;;  %v1047_v45 = vcombine.low %v460_v6, %v464_v7  ;;  %3300 = vrsqrt.f32 %v3665_v8 }
  0xb2   :  { %v1037_v50 = vrot.slane %v1029_v19, %v3490_v31  ;;  %v1048_v33 = vcombine.low %v468_v15, %v472_v21  ;;  %v1049_v35 = vcombine.low %v476_v37, %v480_v39  ;;  %v484_v47 = vrot.slane %v3567_v16, %v3464_v22 }
  0xb3   :  { %v3685_v51 = vpop.eup %3290  ;;  %v1044_v54 = vrot.slane %v1030_v41, %v3490_v31  ;;  %v1056_v55 = vrot.slane %v1046_v42, %v3490_v31  ;;  %v1063_v56 = vrot.slane %v1047_v45, %v3490_v31  ;;  %v488_v58 = vrot.slane %v3567_v16, %v3467_v23 }
  0xb4   :  { %v3692_v60 = vpop.eup %3292  ;;  %v1070_v61 = vrot.slane %v1048_v33, %v3490_v31  ;;  %v1077_v62 = vrot.slane %v1049_v35, %v3490_v31  ;;  %v492_v1 = vrot.slane %v3567_v16, %v3470_v24  ;;  %v496_v2 = vrot.slane %v3567_v16, %v3473_v25 }
  0xb5   :  { %v1045_v3 = vcombine.low %v1037_v50, %v1044_v54  ;;  %v1078_v6 = vcombine.low %v1056_v55, %v1063_v56  ;;  %v500_v7 = vrot.slane %v3567_v16, %v3476_v26  ;;  %v504_v12 = vrot.slane %v3567_v16, %v3479_v27 }
  0xb6   :  { %v1079_v13 = vcombine.low %v1070_v61, %v1077_v62  ;;  %v508_v15 = vrot.slane %v3567_v16, %v3482_v28  ;;  %v512_v19 = vrot.slane %v3567_v16, %v3487_v30  ;;  %v1095_v21 = vcombine.low %v484_v47, %v488_v58 }
  0xb7   :  { %v3708_v37 = vpop.eup %3294  ;;  %1598 = vperm.xlu1 %3269, %v1045_v3   ;;  %v1086_v39 = vrot.slane %v1078_v6, %v3490_v31  ;;  %v1096_v41 = vcombine.low %v492_v1, %v496_v2  ;;  %v1097_v42 = vcombine.low %v500_v7, %v504_v12  ;;  %v516_v45 = vrot.slane %v3559_v11, %v3464_v22 }
  0xb8   :  { %v3713_v50 = vpop.eup %3296  ;;  %v1093_v33 = vrot.slane %v1079_v13, %v3490_v31  ;;  %v1098_v35 = vcombine.low %v508_v15, %v512_v19  ;;  %v1105_v54 = vrot.slane %v1095_v21, %v3490_v31  ;;  %v520_v47 = vrot.slane %v3559_v11, %v3467_v23 }
  0xb9   :  { %v1112_v55 = vrot.slane %v1096_v41, %v3490_v31  ;;  %v1119_v56 = vrot.slane %v1097_v42, %v3490_v31  ;;  %v524_v58 = vrot.slane %v3559_v11, %v3470_v24  ;;  %v528_v61 = vrot.slane %v3559_v11, %v3473_v25 }
  0xba   :  { %v1094_v62 = vcombine.low %v1086_v39, %v1093_v33  ;;  %v1126_v1 = vrot.slane %v1098_v35, %v3490_v31  ;;  %v532_v2 = vrot.slane %v3559_v11, %v3476_v26  ;;  %v536_v3 = vrot.slane %v3559_v11, %v3479_v27 }
  0xbb   :  { %v1127_v6 = vcombine.low %v1105_v54, %v1112_v55  ;;  %v540_v7 = vrot.slane %v3559_v11, %v3482_v28  ;;  %v544_v12 = vrot.slane %v3559_v11, %v3487_v30  ;;  %v1144_v13 = vcombine.low %v516_v45, %v520_v47 }
  0xbc   :  { %v3734_v15 = vpop.eup %3298  ;;  %1601 = vperm.xlu1 %3269, %v1094_v62   ;;  %v1128_v19 = vcombine.low %v1119_v56, %v1126_v1  ;;  %v1145_v21 = vcombine.low %v524_v58, %v528_v61  ;;  %v1146_v39 = vcombine.low %v532_v2, %v536_v3  ;;  %v157_v41 = vmul.f32 %v3621_v14, %v3549_v0 }
  0xbd   :  { %v1135_v42 = vrot.slane %v1127_v6, %v3490_v31  ;;  %v1147_v33 = vcombine.low %v540_v7, %v544_v12  ;;  %v1154_v35 = vrot.slane %v1144_v13, %v3490_v31  ;;  %vm158_vm1 = vcmp.eq.f32.partialorder %v3549_v0, inf }
  0xbe   :  { %v3741_v54 = vpop.eup %3300  ;;  %v1142_v45 = vrot.slane %v1128_v19, %v3490_v31  ;;  %v1161_v47 = vrot.slane %v1145_v21, %v3490_v31  ;;  %v1168_v55 = vrot.slane %v1146_v39, %v3490_v31  ;;  %v159_v56 = vsel %vm158_vm1, %v3549_v0, %v157_v41 }
  0xbf   :  { %v1175_v58 = vrot.slane %v1147_v33, %v3490_v31  ;;  %vm160_vm2 = vcmp.eq.f32.partialorder %v3549_v0, 0.0  ;;  %v161_v14 = vand.u32 2147483648, %v3549_v0  ;;  %v548_v61 = vrot.slane %v3586_v46, %v3464_v22 }
  0xc0   :  { %v1143_v62 = vcombine.low %v1135_v42, %v1142_v45  ;;  %v1176_v1 = vcombine.low %v1154_v35, %v1161_v47  ;;  %v552_v2 = vrot.slane %v3586_v46, %v3467_v23  ;;  %v556_v3 = vrot.slane %v3586_v46, %v3470_v24 }
  0xc1   :  { %v1177_v6 = vcombine.low %v1168_v55, %v1175_v58  ;;  %v162_v7 = vsel %vm160_vm2, %v161_v14, %v159_v56  ;;  %v560_v12 = vrot.slane %v3586_v46, %v3473_v25  ;;  %v564_v13 = vrot.slane %v3586_v46, %v3476_v26 }
  0xc2   :  { %1604 = vperm.xlu1 %3269, %v1143_v62   ;;  %v1184_v0 = vrot.slane %v1176_v1, %v3490_v31  ;;  %v244_v19 = vsub.f32 1.25, %v162_v7  ;;  %v568_v21 = vrot.slane %v3586_v46, %v3479_v27  ;;  %v572_v39 = vrot.slane %v3586_v46, %v3482_v28 }
  0xc3   :  { %v1191_v41 = vrot.slane %v1177_v6, %v3490_v31  ;;  %v576_v42 = vrot.slane %v3586_v46, %v3487_v30  ;;  %v1193_v33 = vcombine.low %v548_v61, %v552_v2  ;;  %v1194_v35 = vcombine.low %v556_v3, %v560_v12 }
  0xc4   :  { %v260_v45 = vmax.f32 %v244_v19, 0.0  ;;  %v1195_v47 = vcombine.low %v564_v13, %v568_v21  ;;  %v164_v55 = vmul.f32 %v3615_v9, %v3539_v59  ;;  %vm165_vm3 = vcmp.eq.f32.partialorder %v3539_v59, inf }
  0xc5   :  { %v1192_v56 = vcombine.low %v1184_v0, %v1191_v41  ;;  %v1196_v58 = vcombine.low %v572_v39, %v576_v42  ;;  %v1203_v14 = vrot.slane %v1193_v33, %v3490_v31  ;;  %v1210_v62 = vrot.slane %v1194_v35, %v3490_v31 }
  0xc6   :  { %v1765_v1 = vmul.f32 %v260_v45, %v260_v45  ;;  %v1217_v6 = vrot.slane %v1195_v47, %v3490_v31  ;;  %v166_v7 = vsel %vm165_vm3, %v3539_v59, %v164_v55  ;;  %vm167_vm4 = vcmp.eq.f32.partialorder %v3539_v59, 0.0 }
  0xc7   :  { %1607 = vperm.xlu1 %3269, %v1192_v56   ;;  %v1224_v61 = vrot.slane %v1196_v58, %v3490_v31  ;;  %v1225_v2 = vcombine.low %v1203_v14, %v1210_v62  ;;  %v168_v9 = vand.u32 2147483648, %v3539_v59  ;;  %v580_v3 = vrot.slane %v3577_v49, %v3464_v22 }
  0xc8   :  { %v1924_v12 = vrot.slane %v1765_v1, %v3464_v22  ;;  %v1928_v13 = vrot.slane %v1765_v1, %v3467_v23  ;;  %v1932_v0 = vrot.slane %v1765_v1, %v3470_v24  ;;  %v1936_v19 = vrot.slane %v1765_v1, %v3473_v25 }
  0xc9   :  { %v1940_v21 = vrot.slane %v1765_v1, %v3476_v26  ;;  %v1944_v39 = vrot.slane %v1765_v1, %v3479_v27  ;;  %v1948_v41 = vrot.slane %v1765_v1, %v3482_v28  ;;  %v1952_v42 = vrot.slane %v1765_v1, %v3487_v30 }
  0xca   :  { %v2501_v33 = vcombine.low %v1924_v12, %v1928_v13  ;;  %v2502_v35 = vcombine.low %v1932_v0, %v1936_v19  ;;  %v1226_v45 = vcombine.low %v1217_v6, %v1224_v61  ;;  %v1233_v47 = vrot.slane %v1225_v2, %v3490_v31 }
  0xcb   :  { %v2503_v55 = vcombine.low %v1940_v21, %v1944_v39  ;;  %v2504_v56 = vcombine.low %v1948_v41, %v1952_v42  ;;  %v169_v58 = vsel %vm167_vm4, %v168_v9, %v166_v7  ;;  %v584_v14 = vrot.slane %v3577_v49, %v3467_v23 }
  0xcc   :  { %v2511_v62 = vrot.slane %v2501_v33, %v3490_v31  ;;  %v2518_v17 = vrot.slane %v2502_v35, %v3490_v31  ;;  %v1240_v20 = vrot.slane %v1226_v45, %v3490_v31  ;;  %v245_v1 = vsub.f32 1.25, %v169_v58 }
  0xcd   :  { %v2525_v12 = vrot.slane %v2503_v55, %v3490_v31  ;;  %v2532_v6 = vrot.slane %v2504_v56, %v3490_v31  ;;  %v588_v61 = vrot.slane %v3577_v49, %v3470_v24  ;;  %v592_v59 = vrot.slane %v3577_v49, %v3473_v25 }
  0xce   :  { %v2533_v7 = vcombine.low %v2511_v62, %v2518_v17  ;;  %v1241_v2 = vcombine.low %v1233_v47, %v1240_v20  ;;  %v261_v9 = vmax.f32 %v245_v1, 0.0  ;;  %v596_v13 = vrot.slane %v3577_v49, %v3476_v26 }
  0xcf   :  { %v2534_v0 = vcombine.low %v2525_v12, %v2532_v6  ;;  %v600_v19 = vrot.slane %v3577_v49, %v3479_v27  ;;  %v604_v21 = vrot.slane %v3577_v49, %v3482_v28  ;;  %v608_v39 = vrot.slane %v3577_v49, %v3487_v30 }
  0xd0   :  { %v2541_v41 = vrot.slane %v2533_v7, %v3490_v31  ;;  %1610 = vperm.xlu1 %3269, %v1241_v2   ;;  %v1766_v42 = vmul.f32 %v261_v9, %v261_v9  ;;  %v1242_v17 = vcombine.low %v580_v3, %v584_v14  ;;  %v1243_v20 = vcombine.low %v588_v61, %v592_v59 }
  0xd1   :  { %v2548_v33 = vrot.slane %v2534_v0, %v3490_v31  ;;  %v1244_v35 = vcombine.low %v596_v13, %v600_v19  ;;  %v1245_v45 = vcombine.low %v604_v21, %v608_v39  ;;  %v171_v47 = vmul.f32 %v3648_v52, %v3567_v16 }
  0xd2   :  { %v1956_v55 = vrot.slane %v1766_v42, %v3464_v22  ;;  %v1960_v56 = vrot.slane %v1766_v42, %v3467_v23  ;;  %v1964_v58 = vrot.slane %v1766_v42, %v3470_v24  ;;  %v1968_v62 = vrot.slane %v1766_v42, %v3473_v25 }
  0xd3   :  { %v2549_v1 = vcombine.low %v2541_v41, %v2548_v33  ;;  %v1972_v12 = vrot.slane %v1766_v42, %v3476_v26  ;;  %v1976_v3 = vrot.slane %v1766_v42, %v3479_v27  ;;  %v1980_v14 = vrot.slane %v1766_v42, %v3482_v28 }
  0xd4   :  { %v1984_v6 = vrot.slane %v1766_v42, %v3487_v30  ;;  %v2550_v61 = vcombine.low %v1956_v55, %v1960_v56  ;;  %v2551_v59 = vcombine.low %v1964_v58, %v1968_v62  ;;  %v1252_v52 = vrot.slane %v1242_v17, %v3490_v31 }
  0xd5   :  { %3102 = vperm.xlu0 %3268, %v2549_v1   ;;  %v2552_v7 = vcombine.low %v1972_v12, %v1976_v3  ;;  %v1259_v2 = vrot.slane %v1243_v20, %v3490_v31  ;;  %v1266_v9 = vrot.slane %v1244_v35, %v3490_v31  ;;  %v1273_v13 = vrot.slane %v1245_v45, %v3490_v31 }
  0xd6   :  { %v2553_v0 = vcombine.low %v1980_v14, %v1984_v6  ;;  %v2560_v19 = vrot.slane %v2550_v61, %v3490_v31  ;;  %v2567_v21 = vrot.slane %v2551_v59, %v3490_v31  ;;  %vm172_vm5 = vcmp.eq.f32.partialorder %v3567_v16, inf }
  0xd7   :  { %v2574_v39 = vrot.slane %v2552_v7, %v3490_v31  ;;  %v1274_v41 = vcombine.low %v1252_v52, %v1259_v2  ;;  %v1275_v42 = vcombine.low %v1266_v9, %v1273_v13  ;;  %v173_v17 = vsel %vm172_vm5, %v3567_v16, %v171_v47 }
  0xd8   :  { %v2581_v33 = vrot.slane %v2553_v0, %v3490_v31  ;;  %v2582_v20 = vcombine.low %v2560_v19, %v2567_v21  ;;  %vm174_vm6 = vcmp.eq.f32.partialorder %v3567_v16, 0.0  ;;  %v175_v35 = vand.u32 2147483648, %v3567_v16 }
  0xd9   :  { %v1282_v45 = vrot.slane %v1274_v41, %v3490_v31  ;;  %v1289_v55 = vrot.slane %v1275_v42, %v3490_v31  ;;  %v612_v56 = vrot.slane %v3612_v5, %v3464_v22  ;;  %v616_v58 = vrot.slane %v3612_v5, %v3467_v23 }
  0xda   :  { %v2583_v62 = vcombine.low %v2574_v39, %v2581_v33  ;;  %v2590_v47 = vrot.slane %v2582_v20, %v3490_v31  ;;  %v176_v1 = vsel %vm174_vm6, %v175_v35, %v173_v17  ;;  %v620_v12 = vrot.slane %v3612_v5, %v3470_v24 }
  0xdb   :  { %v1290_v3 = vcombine.low %v1282_v45, %v1289_v55  ;;  %v246_v14 = vsub.f32 1.25, %v176_v1  ;;  %v624_v16 = vrot.slane %v3612_v5, %v3473_v25  ;;  %v628_v6 = vrot.slane %v3612_v5, %v3476_v26 }
  0xdc   :  { %v2597_v61 = vrot.slane %v2583_v62, %v3490_v31  ;;  %v632_v59 = vrot.slane %v3612_v5, %v3479_v27  ;;  %v636_v52 = vrot.slane %v3612_v5, %v3482_v28  ;;  %v640_v7 = vrot.slane %v3612_v5, %v3487_v30 }
  0xdd   :  { %1613 = vperm.xlu1 %3269, %v1290_v3   ;;  %v262_v2 = vmax.f32 %v246_v14, 0.0  ;;  %v1291_v9 = vcombine.low %v612_v56, %v616_v58  ;;  %v1292_v13 = vcombine.low %v620_v12, %v624_v16  ;;  %v178_v0 = vmul.f32 %v3643_v34, %v3559_v11 }
  0xde   :  { %v2598_v19 = vcombine.low %v2590_v47, %v2597_v61  ;;  %v1293_v21 = vcombine.low %v628_v6, %v632_v59  ;;  %v1294_v39 = vcombine.low %v636_v52, %v640_v7  ;;  %vm179_vm7 = vcmp.eq.f32.partialorder %v3559_v11, inf }
  0xdf   :  { %v1767_v41 = vmul.f32 %v262_v2, %v262_v2  ;;  %v1301_v42 = vrot.slane %v1291_v9, %v3490_v31  ;;  %v1308_v17 = vrot.slane %v1292_v13, %v3490_v31  ;;  %v180_v33 = vsel %vm179_vm7, %v3559_v11, %v178_v0 }
  0xe0   :  { %3105 = vperm.xlu0 %3268, %v2598_v19   ;;  %v1315_v20 = vrot.slane %v1293_v21, %v3490_v31  ;;  %v1322_v35 = vrot.slane %v1294_v39, %v3490_v31  ;;  %vm181_vm8 = vcmp.eq.f32.partialorder %v3559_v11, 0.0  ;;  %v182_v34 = vand.u32 2147483648, %v3559_v11 }
  0xe1   :  { %v1988_v45 = vrot.slane %v1767_v41, %v3464_v22  ;;  %v1992_v55 = vrot.slane %v1767_v41, %v3467_v23  ;;  %v1996_v56 = vrot.slane %v1767_v41, %v3470_v24  ;;  %v2000_v58 = vrot.slane %v1767_v41, %v3473_v25 }
  0xe2   :  { %v2004_v62 = vrot.slane %v1767_v41, %v3476_v26  ;;  %v2008_v47 = vrot.slane %v1767_v41, %v3479_v27  ;;  %v2012_v1 = vrot.slane %v1767_v41, %v3482_v28  ;;  %v2016_v12 = vrot.slane %v1767_v41, %v3487_v30 }
  0xe3   :  { %v2599_v3 = vcombine.low %v1988_v45, %v1992_v55  ;;  %v2600_v14 = vcombine.low %v1996_v56, %v2000_v58  ;;  %v1323_v16 = vcombine.low %v1301_v42, %v1308_v17  ;;  %v1324_v6 = vcombine.low %v1315_v20, %v1322_v35 }
  0xe4   :  { %v2601_v61 = vcombine.low %v2004_v62, %v2008_v47  ;;  %v2602_v59 = vcombine.low %v2012_v1, %v2016_v12  ;;  %v183_v52 = vsel %vm181_vm8, %v182_v34, %v180_v33  ;;  %v644_v7 = vrot.slane %v3604_v63, %v3464_v22 }
  0xe5   :  { %v2609_v2 = vrot.slane %v2599_v3, %v3490_v31  ;;  %v2616_v9 = vrot.slane %v2600_v14, %v3490_v31  ;;  %v1331_v13 = vrot.slane %v1323_v16, %v3490_v31  ;;  %v1338_v0 = vrot.slane %v1324_v6, %v3490_v31 }
  0xe6   :  { %v2623_v19 = vrot.slane %v2601_v61, %v3490_v31  ;;  %v2630_v21 = vrot.slane %v2602_v59, %v3490_v31  ;;  %v247_v39 = vsub.f32 1.25, %v183_v52  ;;  %v648_v11 = vrot.slane %v3604_v63, %v3467_v23 }
  0xe7   :  { %v2631_v41 = vcombine.low %v2609_v2, %v2616_v9  ;;  %v1339_v42 = vcombine.low %v1331_v13, %v1338_v0  ;;  %v652_v17 = vrot.slane %v3604_v63, %v3470_v24  ;;  %v656_v33 = vrot.slane %v3604_v63, %v3473_v25 }
  0xe8   :  { %v2632_v20 = vcombine.low %v2623_v19, %v2630_v21  ;;  %v263_v35 = vmax.f32 %v247_v39, 0.0  ;;  %v660_v34 = vrot.slane %v3604_v63, %v3476_v26  ;;  %v664_v45 = vrot.slane %v3604_v63, %v3479_v27 }
  0xe9   :  { %v2639_v55 = vrot.slane %v2631_v41, %v3490_v31  ;;  %1616 = vperm.xlu1 %3269, %v1339_v42   ;;  %v668_v56 = vrot.slane %v3604_v63, %v3482_v28  ;;  %v672_v58 = vrot.slane %v3604_v63, %v3487_v30  ;;  %v1340_v62 = vcombine.low %v644_v7, %v648_v11 }
  0xea   :  { %v2646_v47 = vrot.slane %v2632_v20, %v3490_v31  ;;  %v1768_v1 = vmul.f32 %v263_v35, %v263_v35  ;;  %v1341_v12 = vcombine.low %v652_v17, %v656_v33  ;;  %v1342_v3 = vcombine.low %v660_v34, %v664_v45 }
  0xeb   :  { %v1343_v14 = vcombine.low %v668_v56, %v672_v58  ;;  %v1350_v16 = vrot.slane %v1340_v62, %v3490_v31  ;;  %v185_v6 = vmul.f32 %v3673_v18, %v3586_v46  ;;  %vm186_vm9 = vcmp.eq.f32.partialorder %v3586_v46, inf }
  0xec   :  { %v2647_v61 = vcombine.low %v2639_v55, %v2646_v47  ;;  %v2020_v59 = vrot.slane %v1768_v1, %v3464_v22  ;;  %v2024_v52 = vrot.slane %v1768_v1, %v3467_v23  ;;  %v2028_v7 = vrot.slane %v1768_v1, %v3470_v24 }
  0xed   :  { %v2032_v2 = vrot.slane %v1768_v1, %v3473_v25  ;;  %v2036_v9 = vrot.slane %v1768_v1, %v3476_v26  ;;  %v2040_v13 = vrot.slane %v1768_v1, %v3479_v27  ;;  %v2044_v0 = vrot.slane %v1768_v1, %v3482_v28 }
  0xee   :  { %3108 = vperm.xlu0 %3268, %v2647_v61   ;;  %v2048_v18 = vrot.slane %v1768_v1, %v3487_v30  ;;  %v2648_v19 = vcombine.low %v2020_v59, %v2024_v52  ;;  %v1357_v21 = vrot.slane %v1341_v12, %v3490_v31  ;;  %v1364_v39 = vrot.slane %v1342_v3, %v3490_v31 }
  0xef   :  { %v2649_v11 = vcombine.low %v2028_v7, %v2032_v2  ;;  %v2650_v41 = vcombine.low %v2036_v9, %v2040_v13  ;;  %v1371_v42 = vrot.slane %v1343_v14, %v3490_v31  ;;  %v187_v17 = vsel %vm186_vm9, %v3586_v46, %v185_v6 }
  0xf0   :  { %v2651_v33 = vcombine.low %v2044_v0, %v2048_v18  ;;  %v2658_v20 = vrot.slane %v2648_v19, %v3490_v31  ;;  %v1372_v35 = vcombine.low %v1350_v16, %v1357_v21  ;;  %vm188_vm10 = vcmp.eq.f32.partialorder %v3586_v46, 0.0 }
  0xf1   :  { %v2665_v34 = vrot.slane %v2649_v11, %v3490_v31  ;;  %v2672_v45 = vrot.slane %v2650_v41, %v3490_v31  ;;  %v1373_v55 = vcombine.low %v1364_v39, %v1371_v42  ;;  %v189_v56 = vand.u32 2147483648, %v3586_v46 }
  0xf2   :  { %v2679_v58 = vrot.slane %v2651_v33, %v3490_v31  ;;  %v1380_v62 = vrot.slane %v1372_v35, %v3490_v31  ;;  %v676_v47 = vrot.slane %v3636_v44, %v3464_v22  ;;  %v680_v1 = vrot.slane %v3636_v44, %v3467_v23 }
  0xf3   :  { %v2680_v12 = vcombine.low %v2658_v20, %v2665_v34  ;;  %v1387_v3 = vrot.slane %v1373_v55, %v3490_v31  ;;  %v190_v14 = vsel %vm188_vm10, %v189_v56, %v187_v17  ;;  %v684_v16 = vrot.slane %v3636_v44, %v3470_v24 }
  0xf4   :  { %v2681_v6 = vcombine.low %v2672_v45, %v2679_v58  ;;  %v248_v61 = vsub.f32 1.25, %v190_v14  ;;  %v688_v46 = vrot.slane %v3636_v44, %v3473_v25  ;;  %v692_v59 = vrot.slane %v3636_v44, %v3476_v26 }
  0xf5   :  { %v2688_v52 = vrot.slane %v2680_v12, %v3490_v31  ;;  %v1388_v7 = vcombine.low %v1380_v62, %v1387_v3  ;;  %v696_v2 = vrot.slane %v3636_v44, %v3479_v27  ;;  %v700_v9 = vrot.slane %v3636_v44, %v3482_v28 }
  0xf6   :  { %v2695_v13 = vrot.slane %v2681_v6, %v3490_v31  ;;  %v264_v0 = vmax.f32 %v248_v61, 0.0  ;;  %v704_v18 = vrot.slane %v3636_v44, %v3487_v30  ;;  %v1389_v19 = vcombine.low %v676_v47, %v680_v1 }
  0xf7   :  { %1619 = vperm.xlu1 %3269, %v1388_v7   ;;  %v1390_v21 = vcombine.low %v684_v16, %v688_v46  ;;  %v1391_v39 = vcombine.low %v692_v59, %v696_v2  ;;  %v192_v11 = vmul.f32 %v3667_v10, %v3577_v49  ;;  %vm193_vm11 = vcmp.eq.f32.partialorder %v3577_v49, inf }
  0xf8   :  { %v2696_v41 = vcombine.low %v2688_v52, %v2695_v13  ;;  %v1769_v42 = vmul.f32 %v264_v0, %v264_v0  ;;  %v1392_v17 = vcombine.low %v700_v9, %v704_v18  ;;  %v1399_v33 = vrot.slane %v1389_v19, %v3490_v31 }
  0xf9   :  { %v1406_v20 = vrot.slane %v1390_v21, %v3490_v31  ;;  %v1413_v35 = vrot.slane %v1391_v39, %v3490_v31  ;;  %v194_v34 = vsel %vm193_vm11, %v3577_v49, %v192_v11  ;;  %vm195_vm12 = vcmp.eq.f32.partialorder %v3577_v49, 0.0 }
  0xfa   :  { %3111 = vperm.xlu0 %3268, %v2696_v41   ;;  %v2052_v45 = vrot.slane %v1769_v42, %v3464_v22  ;;  %v2056_v10 = vrot.slane %v1769_v42, %v3467_v23  ;;  %v2060_v55 = vrot.slane %v1769_v42, %v3470_v24  ;;  %v2064_v56 = vrot.slane %v1769_v42, %v3473_v25 }
  0xfb   :  { %v2068_v58 = vrot.slane %v1769_v42, %v3476_v26  ;;  %v2072_v62 = vrot.slane %v1769_v42, %v3479_v27  ;;  %v2076_v47 = vrot.slane %v1769_v42, %v3482_v28  ;;  %v2080_v1 = vrot.slane %v1769_v42, %v3487_v30 }
  0xfc   :  { %v2697_v12 = vcombine.low %v2052_v45, %v2056_v10  ;;  %v2698_v3 = vcombine.low %v2060_v55, %v2064_v56  ;;  %v1420_v14 = vrot.slane %v1392_v17, %v3490_v31  ;;  %v1421_v16 = vcombine.low %v1399_v33, %v1406_v20 }
  0xfd   :  { %v2699_v6 = vcombine.low %v2068_v58, %v2072_v62  ;;  %v2700_v61 = vcombine.low %v2076_v47, %v2080_v1  ;;  %v196_v46 = vand.u32 2147483648, %v3577_v49  ;;  %v129_v59 = vmul.f32 %v3574_v40, %v3493_v32 }
  0xfe   :  { %v2707_v52 = vrot.slane %v2697_v12, %v3490_v31  ;;  %v2714_v7 = vrot.slane %v2698_v3, %v3490_v31  ;;  %v1422_v2 = vcombine.low %v1413_v35, %v1420_v14  ;;  %v1429_v9 = vrot.slane %v1421_v16, %v3490_v31 }
  0xff   :  { %v2721_v13 = vrot.slane %v2699_v6, %v3490_v31  ;;  %v2728_v0 = vrot.slane %v2700_v61, %v3490_v31  ;;  %v197_v18 = vsel %vm195_vm12, %v196_v46, %v194_v34  ;;  %vm130_vm13 = vcmp.eq.f32.partialorder %v3493_v32, inf }
 0x100   :  { %v2729_v19 = vcombine.low %v2707_v52, %v2714_v7  ;;  %v1436_v21 = vrot.slane %v1422_v2, %v3490_v31  ;;  %v249_v40 = vsub.f32 1.25, %v197_v18  ;;  %v131_v39 = vsel %vm130_vm13, %v3493_v32, %v129_v59 }
 0x101   :  { %v2730_v11 = vcombine.low %v2721_v13, %v2728_v0  ;;  %vm132_vm14 = vcmp.eq.f32.partialorder %v3493_v32, 0.0  ;;  %v133_v41 = vand.u32 2147483648, %v3493_v32  ;;  %v199_v42 = vmul.f32 %v3692_v60, %v3612_v5 }
 0x102   :  { %v2737_v17 = vrot.slane %v2729_v19, %v3490_v31  ;;  %v1437_v49 = vcombine.low %v1429_v9, %v1436_v21  ;;  %v265_v33 = vmax.f32 %v249_v40, 0.0  ;;  %vm200_vm15 = vcmp.eq.f32.partialorder %v3612_v5, inf }
 0x103   :  { %v2744_v20 = vrot.slane %v2730_v11, %v3490_v31  ;;  %v134_v35 = vsel %vm132_vm14, %v133_v41, %v131_v39  ;;  %v201_v34 = vsel %vm200_vm15, %v3612_v5, %v199_v42  ;;  %vm202_vm0 = vcmp.eq.f32.partialorder %v3612_v5, 0.0 }
 0x104   :  { %1622 = vperm.xlu1 %3269, %v1437_v49   ;;  %v1770_v45 = vmul.f32 %v265_v33, %v265_v33  ;;  %v240_v10 = vsub.f32 1.25, %v134_v35  ;;  %v203_v32 = vand.u32 2147483648, %v3612_v5  ;;  %v136_v60 = vmul.f32 %v3598_v57, %v3525_v48 }
 0x105   :  { %v2745_v55 = vcombine.low %v2737_v17, %v2744_v20  ;;  %vm137_vm1 = vcmp.eq.f32.partialorder %v3525_v48, inf  ;;  %vm139_vm2 = vcmp.eq.f32.partialorder %v3525_v48, 0.0  ;;  %v140_v56 = vand.u32 2147483648, %v3525_v48 }
 0x106   :  { %v2084_v58 = vrot.slane %v1770_v45, %v3464_v22  ;;  %v2088_v62 = vrot.slane %v1770_v45, %v3467_v23  ;;  %v2092_v47 = vrot.slane %v1770_v45, %v3470_v24  ;;  %v2096_v1 = vrot.slane %v1770_v45, %v3473_v25 }
 0x107   :  { %3114 = vperm.xlu0 %3268, %v2745_v55   ;;  %v2100_v12 = vrot.slane %v1770_v45, %v3476_v26  ;;  %v2104_v57 = vrot.slane %v1770_v45, %v3479_v27  ;;  %v2108_v3 = vrot.slane %v1770_v45, %v3482_v28  ;;  %v2112_v14 = vrot.slane %v1770_v45, %v3487_v30 }
 0x108   :  { %v2746_v16 = vcombine.low %v2084_v58, %v2088_v62  ;;  %v2747_v6 = vcombine.low %v2092_v47, %v2096_v1  ;;  %v256_v61 = vmax.f32 %v240_v10, 0.0  ;;  %v204_v46 = vsel %vm202_vm0, %v203_v32, %v201_v34 }
 0x109   :  { %v2748_v59 = vcombine.low %v2100_v12, %v2104_v57  ;;  %v2749_v52 = vcombine.low %v2108_v3, %v2112_v14  ;;  %v250_v7 = vsub.f32 1.25, %v204_v46  ;;  %v138_v2 = vsel %vm137_vm1, %v3525_v48, %v136_v60 }
 0x10a   :  { %v2756_v9 = vrot.slane %v2746_v16, %v3490_v31  ;;  %v2763_v13 = vrot.slane %v2747_v6, %v3490_v31  ;;  %v1761_v0 = vmul.f32 %v256_v61, %v256_v61  ;;  %v141_v18 = vsel %vm139_vm2, %v140_v56, %v138_v2 }
 0x10b   :  { %v2770_v19 = vrot.slane %v2748_v59, %v3490_v31  ;;  %v2777_v5 = vrot.slane %v2749_v52, %v3490_v31  ;;  %v266_v21 = vmax.f32 %v250_v7, 0.0  ;;  %v241_v40 = vsub.f32 1.25, %v141_v18 }
 0x10c   :  { %v2778_v39 = vcombine.low %v2756_v9, %v2763_v13  ;;  %v1796_v11 = vrot.slane %v1761_v0, %v3464_v22  ;;  %v1800_v41 = vrot.slane %v1761_v0, %v3467_v23  ;;  %v1804_v42 = vrot.slane %v1761_v0, %v3470_v24 }
 0x10d   :  { %v2779_v17 = vcombine.low %v2770_v19, %v2777_v5  ;;  %v1808_v49 = vrot.slane %v1761_v0, %v3473_v25  ;;  %v1812_v33 = vrot.slane %v1761_v0, %v3476_v26  ;;  %v1816_v48 = vrot.slane %v1761_v0, %v3479_v27 }
 0x10e   :  { %v2786_v20 = vrot.slane %v2778_v39, %v3490_v31  ;;  %v1820_v35 = vrot.slane %v1761_v0, %v3482_v28  ;;  %v1824_v34 = vrot.slane %v1761_v0, %v3487_v30  ;;  %v2305_v45 = vcombine.low %v1796_v11, %v1800_v41 }
 0x10f   :  { %v2793_v10 = vrot.slane %v2779_v17, %v3490_v31  ;;  %v2306_v32 = vcombine.low %v1804_v42, %v1808_v49  ;;  %v2307_v60 = vcombine.low %v1812_v33, %v1816_v48  ;;  %v1771_v55 = vmul.f32 %v266_v21, %v266_v21 }
 0x110   :  { %v2308_v56 = vcombine.low %v1820_v35, %v1824_v34  ;;  %v2315_v58 = vrot.slane %v2305_v45, %v3490_v31  ;;  %v257_v62 = vmax.f32 %v241_v40, 0.0  ;;  %v206_v47 = vmul.f32 %v3685_v51, %v3604_v63 }
 0x111   :  { %v2794_v1 = vcombine.low %v2786_v20, %v2793_v10  ;;  %v2322_v12 = vrot.slane %v2306_v32, %v3490_v31  ;;  %v2329_v57 = vrot.slane %v2307_v60, %v3490_v31  ;;  %v2116_v3 = vrot.slane %v1771_v55, %v3464_v22 }
 0x112   :  { %v2336_v14 = vrot.slane %v2308_v56, %v3490_v31  ;;  %v2120_v16 = vrot.slane %v1771_v55, %v3467_v23  ;;  %v2124_v6 = vrot.slane %v1771_v55, %v3470_v24  ;;  %v2128_v61 = vrot.slane %v1771_v55, %v3473_v25 }
 0x113   :  { %3117 = vperm.xlu0 %3268, %v2794_v1   ;;  %v2337_v46 = vcombine.low %v2315_v58, %v2322_v12  ;;  %v2132_v59 = vrot.slane %v1771_v55, %v3476_v26  ;;  %v2136_v51 = vrot.slane %v1771_v55, %v3479_v27  ;;  %v2140_v52 = vrot.slane %v1771_v55, %v3482_v28 }
 0x114   :  { %v2338_v7 = vcombine.low %v2329_v57, %v2336_v14  ;;  %v2144_v2 = vrot.slane %v1771_v55, %v3487_v30  ;;  %v2795_v9 = vcombine.low %v2116_v3, %v2120_v16  ;;  %v2796_v13 = vcombine.low %v2124_v6, %v2128_v61 }
 0x115   :  { %v2345_v0 = vrot.slane %v2337_v46, %v3490_v31  ;;  %v2797_v18 = vcombine.low %v2132_v59, %v2136_v51  ;;  %v1762_v19 = vmul.f32 %v257_v62, %v257_v62  ;;  %vm207_vm3 = vcmp.eq.f32.partialorder %v3604_v63, inf }
 0x116   :  { %v2352_v5 = vrot.slane %v2338_v7, %v3490_v31  ;;  %v2798_v21 = vcombine.low %v2140_v52, %v2144_v2  ;;  %v2805_v40 = vrot.slane %v2795_v9, %v3490_v31  ;;  %v2812_v39 = vrot.slane %v2796_v13, %v3490_v31 }
 0x117   :  { %v2819_v11 = vrot.slane %v2797_v18, %v3490_v31  ;;  %v1828_v41 = vrot.slane %v1762_v19, %v3464_v22  ;;  %v1832_v42 = vrot.slane %v1762_v19, %v3467_v23  ;;  %v1836_v17 = vrot.slane %v1762_v19, %v3470_v24 }
 0x118   :  { %v2353_v49 = vcombine.low %v2345_v0, %v2352_v5  ;;  %v2826_v33 = vrot.slane %v2798_v21, %v3490_v31  ;;  %v2827_v48 = vcombine.low %v2805_v40, %v2812_v39  ;;  %v1840_v20 = vrot.slane %v1762_v19, %v3473_v25 }
 0x119   :  { %v1844_v35 = vrot.slane %v1762_v19, %v3476_v26  ;;  %v1848_v34 = vrot.slane %v1762_v19, %v3479_v27  ;;  %v1852_v45 = vrot.slane %v1762_v19, %v3482_v28  ;;  %v1856_v10 = vrot.slane %v1762_v19, %v3487_v30 }
 0x11a   :  { %3090 = vperm.xlu1 %3269, %v2353_v49   ;;  %v2828_v32 = vcombine.low %v2819_v11, %v2826_v33  ;;  %v2835_v60 = vrot.slane %v2827_v48, %v3490_v31  ;;  %v2354_v55 = vcombine.low %v1828_v41, %v1832_v42  ;;  %v2355_v56 = vcombine.low %v1836_v17, %v1840_v20 }
 0x11b   :  { %v2356_v58 = vcombine.low %v1844_v35, %v1848_v34  ;;  %v2357_v62 = vcombine.low %v1852_v45, %v1856_v10  ;;  %v208_v1 = vsel %vm207_vm3, %v3604_v63, %v206_v47  ;;  %vm209_vm4 = vcmp.eq.f32.partialorder %v3604_v63, 0.0 }
 0x11c   :  { %v2842_v12 = vrot.slane %v2828_v32, %v3490_v31  ;;  %v2364_v57 = vrot.slane %v2354_v55, %v3490_v31  ;;  %v2371_v3 = vrot.slane %v2355_v56, %v3490_v31  ;;  %v210_v14 = vand.u32 2147483648, %v3604_v63 }
 0x11d   :  { %v2378_v16 = vrot.slane %v2356_v58, %v3490_v31  ;;  %v2385_v6 = vrot.slane %v2357_v62, %v3490_v31  ;;  %v143_v61 = vmul.f32 %v3571_v36, %v3484_v29  ;;  %vm144_vm5 = vcmp.eq.f32.partialorder %v3484_v29, inf }
 0x11e   :  { %v2843_v47 = vcombine.low %v2835_v60, %v2842_v12  ;;  %v2386_v46 = vcombine.low %v2364_v57, %v2371_v3  ;;  %v211_v59 = vsel %vm209_vm4, %v210_v14, %v208_v1  ;;  %vm146_vm6 = vcmp.eq.f32.partialorder %v3484_v29, 0.0 }
 0x11f   :  { %v2387_v51 = vcombine.low %v2378_v16, %v2385_v6  ;;  %v251_v52 = vsub.f32 1.25, %v211_v59  ;;  %v145_v7 = vsel %vm144_vm5, %v3484_v29, %v143_v61  ;;  %v147_v63 = vand.u32 2147483648, %v3484_v29 }
 0x120   :  { %3120 = vperm.xlu0 %3268, %v2843_v47   ;;  %v2394_v2 = vrot.slane %v2386_v46, %v3490_v31  ;;  %v150_v9 = vmul.f32 %v3591_v53, %v3516_v43  ;;  %vm151_vm7 = vcmp.eq.f32.partialorder %v3516_v43, inf  ;;  %vm153_vm8 = vcmp.eq.f32.partialorder %v3516_v43, 0.0 }
 0x121   :  { %v2401_v36 = vrot.slane %v2387_v51, %v3490_v31  ;;  %v267_v13 = vmax.f32 %v251_v52, 0.0  ;;  %v148_v0 = vsel %vm146_vm6, %v147_v63, %v145_v7  ;;  %v154_v18 = vand.u32 2147483648, %v3516_v43 }
 0x122   :  { %v242_v19 = vsub.f32 1.25, %v148_v0  ;;  %v152_v5 = vsel %vm151_vm7, %v3516_v43, %v150_v9  ;;  %v213_v29 = vmul.f32 %v3713_v50, %v3636_v44  ;;  %vm214_vm9 = vcmp.eq.f32.partialorder %v3636_v44, inf }
 0x123   :  { %v2402_v21 = vcombine.low %v2394_v2, %v2401_v36  ;;  %v1772_v53 = vmul.f32 %v267_v13, %v267_v13  ;;  %v155_v40 = vsel %vm153_vm8, %v154_v18, %v152_v5  ;;  %vm216_vm10 = vcmp.eq.f32.partialorder %v3636_v44, 0.0 }
 0x124   :  { %v258_v39 = vmax.f32 %v242_v19, 0.0  ;;  %v243_v11 = vsub.f32 1.25, %v155_v40  ;;  %v215_v41 = vsel %vm214_vm9, %v3636_v44, %v213_v29  ;;  %v217_v42 = vand.u32 2147483648, %v3636_v44 }
 0x125   :  { %3093 = vperm.xlu1 %3269, %v2402_v21   ;;  %v2148_v17 = vrot.slane %v1772_v53, %v3464_v22  ;;  %v2152_v43 = vrot.slane %v1772_v53, %v3467_v23  ;;  %v2156_v50 = vrot.slane %v1772_v53, %v3470_v24  ;;  %v2160_v49 = vrot.slane %v1772_v53, %v3473_v25 }
 0x126   :  { %v2164_v33 = vrot.slane %v1772_v53, %v3476_v26  ;;  %v2168_v48 = vrot.slane %v1772_v53, %v3479_v27  ;;  %v2172_v20 = vrot.slane %v1772_v53, %v3482_v28  ;;  %v2176_v35 = vrot.slane %v1772_v53, %v3487_v30 }
 0x127   :  { %v2844_v34 = vcombine.low %v2148_v17, %v2152_v43  ;;  %v2845_v45 = vcombine.low %v2156_v50, %v2160_v49  ;;  %v1763_v10 = vmul.f32 %v258_v39, %v258_v39  ;;  %v259_v32 = vmax.f32 %v243_v11, 0.0 }
 0x128   :  { %v2846_v60 = vcombine.low %v2164_v33, %v2168_v48  ;;  %v2847_v55 = vcombine.low %v2172_v20, %v2176_v35  ;;  %v218_v56 = vsel %vm216_vm10, %v217_v42, %v215_v41  ;;  %v708_v58 = vrot.slane %v3628_v38, %v3464_v22 }
 0x129   :  { %v2854_v62 = vrot.slane %v2844_v34, %v3490_v31  ;;  %v2861_v1 = vrot.slane %v2845_v45, %v3490_v31  ;;  %v1860_v12 = vrot.slane %v1763_v10, %v3464_v22  ;;  %v1864_v57 = vrot.slane %v1763_v10, %v3467_v23 }
 0x12a   :  { %v2868_v3 = vrot.slane %v2846_v60, %v3490_v31  ;;  %v2875_v14 = vrot.slane %v2847_v55, %v3490_v31  ;;  %v1868_v16 = vrot.slane %v1763_v10, %v3470_v24  ;;  %v1872_v44 = vrot.slane %v1763_v10, %v3473_v25 }
 0x12b   :  { %v2876_v6 = vcombine.low %v2854_v62, %v2861_v1  ;;  %v1876_v61 = vrot.slane %v1763_v10, %v3476_v26  ;;  %v1880_v47 = vrot.slane %v1763_v10, %v3479_v27  ;;  %v1884_v46 = vrot.slane %v1763_v10, %v3482_v28 }
 0x12c   :  { %v2877_v59 = vcombine.low %v2868_v3, %v2875_v14  ;;  %v1888_v51 = vrot.slane %v1763_v10, %v3487_v30  ;;  %v2403_v52 = vcombine.low %v1860_v12, %v1864_v57  ;;  %v2404_v7 = vcombine.low %v1868_v16, %v1872_v44 }
 0x12d   :  { %v2884_v63 = vrot.slane %v2876_v6, %v3490_v31  ;;  %v2405_v2 = vcombine.low %v1876_v61, %v1880_v47  ;;  %v1764_v9 = vmul.f32 %v259_v32, %v259_v32  ;;  %v252_v36 = vsub.f32 1.25, %v218_v56 }
 0x12e   :  { %v2891_v13 = vrot.slane %v2877_v59, %v3490_v31  ;;  %v2406_v0 = vcombine.low %v1884_v46, %v1888_v51  ;;  %v2413_v18 = vrot.slane %v2403_v52, %v3490_v31  ;;  %v2420_v19 = vrot.slane %v2404_v7, %v3490_v31 }
 0x12f   :  { %v2427_v5 = vrot.slane %v2405_v2, %v3490_v31  ;;  %v1892_v29 = vrot.slane %v1764_v9, %v3464_v22  ;;  %v1896_v21 = vrot.slane %v1764_v9, %v3467_v23  ;;  %v1900_v53 = vrot.slane %v1764_v9, %v3470_v24 }
 0x130   :  { %v2892_v40 = vcombine.low %v2884_v63, %v2891_v13  ;;  %v2434_v39 = vrot.slane %v2406_v0, %v3490_v31  ;;  %v2435_v11 = vcombine.low %v2413_v18, %v2420_v19  ;;  %v1904_v41 = vrot.slane %v1764_v9, %v3473_v25 }
 0x131   :  { %v1908_v42 = vrot.slane %v1764_v9, %v3476_v26  ;;  %v1912_v17 = vrot.slane %v1764_v9, %v3479_v27  ;;  %v1916_v43 = vrot.slane %v1764_v9, %v3482_v28  ;;  %v1920_v50 = vrot.slane %v1764_v9, %v3487_v30 }
 0x132   :  { %3123 = vperm.xlu0 %3268, %v2892_v40   ;;  %v2436_v49 = vcombine.low %v2427_v5, %v2434_v39  ;;  %v2443_v33 = vrot.slane %v2435_v11, %v3490_v31  ;;  %v2452_v48 = vcombine.low %v1892_v29, %v1896_v21  ;;  %v2453_v20 = vcombine.low %v1900_v53, %v1904_v41 }
 0x133   :  { %v2454_v35 = vcombine.low %v1908_v42, %v1912_v17  ;;  %v2455_v34 = vcombine.low %v1916_v43, %v1920_v50  ;;  %v268_v45 = vmax.f32 %v252_v36, 0.0  ;;  %v712_v10 = vrot.slane %v3628_v38, %v3467_v23 }
 0x134   :  { %v2450_v32 = vrot.slane %v2436_v49, %v3490_v31  ;;  %v2462_v60 = vrot.slane %v2452_v48, %v3490_v31  ;;  %v2469_v55 = vrot.slane %v2453_v20, %v3490_v31  ;;  %v716_v56 = vrot.slane %v3628_v38, %v3470_v24 }
 0x135   :  { %v2476_v62 = vrot.slane %v2454_v35, %v3490_v31  ;;  %v2483_v1 = vrot.slane %v2455_v34, %v3490_v31  ;;  %v1773_v12 = vmul.f32 %v268_v45, %v268_v45  ;;  %v720_v57 = vrot.slane %v3628_v38, %v3473_v25 }
 0x136   :  { %v2451_v3 = vcombine.low %v2443_v33, %v2450_v32  ;;  %v2484_v14 = vcombine.low %v2462_v60, %v2469_v55  ;;  %v724_v16 = vrot.slane %v3628_v38, %v3476_v26  ;;  %v728_v44 = vrot.slane %v3628_v38, %v3479_v27 }
 0x137   :  { %v2485_v6 = vcombine.low %v2476_v62, %v2483_v1  ;;  %v2180_v61 = vrot.slane %v1773_v12, %v3464_v22  ;;  %v2184_v47 = vrot.slane %v1773_v12, %v3467_v23  ;;  %v2188_v46 = vrot.slane %v1773_v12, %v3470_v24 }
 0x138   :  { %3096 = vperm.xlu1 %3269, %v2451_v3   ;;  %v2492_v59 = vrot.slane %v2484_v14, %v3490_v31  ;;  %v2192_v51 = vrot.slane %v1773_v12, %v3473_v25  ;;  %v2196_v52 = vrot.slane %v1773_v12, %v3476_v26  ;;  %v2200_v7 = vrot.slane %v1773_v12, %v3479_v27 }
 0x139   :  { %v2499_v63 = vrot.slane %v2485_v6, %v3490_v31  ;;  %v2204_v2 = vrot.slane %v1773_v12, %v3482_v28  ;;  %v2208_v9 = vrot.slane %v1773_v12, %v3487_v30  ;;  %v2893_v36 = vcombine.low %v2180_v61, %v2184_v47 }
 0x13a   :  { %v2894_v13 = vcombine.low %v2188_v46, %v2192_v51  ;;  %v2895_v0 = vcombine.low %v2196_v52, %v2200_v7  ;;  %v732_v18 = vrot.slane %v3628_v38, %v3482_v28  ;;  %v736_v19 = vrot.slane %v3628_v38, %v3487_v30 }
 0x13b   :  { %v2500_v5 = vcombine.low %v2492_v59, %v2499_v63  ;;  %v2896_v29 = vcombine.low %v2204_v2, %v2208_v9  ;;  %v2903_v21 = vrot.slane %v2893_v36, %v3490_v31  ;;  %v1438_v53 = vcombine.low %v708_v58, %v712_v10 }
 0x13c   :  { %v2910_v40 = vrot.slane %v2894_v13, %v3490_v31  ;;  %v2917_v39 = vrot.slane %v2895_v0, %v3490_v31  ;;  %v1439_v11 = vcombine.low %v716_v56, %v720_v57  ;;  %v1440_v41 = vcombine.low %v724_v16, %v728_v44 }
 0x13d   :  { %3099 = vperm.xlu1 %3269, %v2500_v5   ;;  %v2924_v42 = vrot.slane %v2896_v29, %v3490_v31  ;;  %v1441_v17 = vcombine.low %v732_v18, %v736_v19  ;;  %v1448_v43 = vrot.slane %v1438_v53, %v3490_v31  ;;  %v220_v50 = vmul.f32 %v3708_v37, %v3628_v38 }
 0x13e   :  { %v2925_v49 = vcombine.low %v2903_v21, %v2910_v40  ;;  %v1455_v33 = vrot.slane %v1439_v11, %v3490_v31  ;;  %v1462_v58 = vrot.slane %v1440_v41, %v3490_v31  ;;  %vm221_vm11 = vcmp.eq.f32.partialorder %v3628_v38, inf }
 0x13f   :  { %v2926_v48 = vcombine.low %v2917_v39, %v2924_v42  ;;  %v1469_v20 = vrot.slane %v1441_v17, %v3490_v31  ;;  %v222_v35 = vsel %vm221_vm11, %v3628_v38, %v220_v50  ;;  %vm223_vm12 = vcmp.eq.f32.partialorder %v3628_v38, 0.0 }
 0x140   :  { %v2933_v34 = vrot.slane %v2925_v49, %v3490_v31  ;;  %v1470_v45 = vcombine.low %v1448_v43, %v1455_v33  ;;  %v224_v10 = vand.u32 2147483648, %v3628_v38  ;;  %v740_v37 = vrot.slane %v3659_v4, %v3464_v22 }
 0x141   :  { %v2940_v32 = vrot.slane %v2926_v48, %v3490_v31  ;;  %v1471_v60 = vcombine.low %v1462_v58, %v1469_v20  ;;  %v744_v55 = vrot.slane %v3659_v4, %v3467_v23  ;;  %v748_v56 = vrot.slane %v3659_v4, %v3470_v24 }
 0x142   :  { %v1478_v62 = vrot.slane %v1470_v45, %v3490_v31  ;;  %v225_v1 = vsel %vm223_vm12, %v224_v10, %v222_v35  ;;  %v752_v12 = vrot.slane %v3659_v4, %v3473_v25  ;;  %v756_v38 = vrot.slane %v3659_v4, %v3476_v26 }
 0x143   :  { %v2941_v57 = vcombine.low %v2933_v34, %v2940_v32  ;;  %v1485_v3 = vrot.slane %v1471_v60, %v3490_v31  ;;  %v253_v14 = vsub.f32 1.25, %v225_v1  ;;  %v760_v16 = vrot.slane %v3659_v4, %v3479_v27 }
 0x144   :  { %v764_v44 = vrot.slane %v3659_v4, %v3482_v28  ;;  %v768_v6 = vrot.slane %v3659_v4, %v3487_v30  ;;  %v1487_v61 = vcombine.low %v740_v37, %v744_v55  ;;  %v1488_v47 = vcombine.low %v748_v56, %v752_v12 }
 0x145   :  { %3126 = vperm.xlu0 %3268, %v2941_v57   ;;  %v1486_v46 = vcombine.low %v1478_v62, %v1485_v3  ;;  %v269_v59 = vmax.f32 %v253_v14, 0.0  ;;  %v1489_v51 = vcombine.low %v756_v38, %v760_v16  ;;  %v227_v52 = vmul.f32 %v3734_v15, %v3659_v4 }
 0x146   :  { %v1490_v7 = vcombine.low %v764_v44, %v768_v6  ;;  %v1497_v63 = vrot.slane %v1487_v61, %v3490_v31  ;;  %v1504_v2 = vrot.slane %v1488_v47, %v3490_v31  ;;  %vm228_vm13 = vcmp.eq.f32.partialorder %v3659_v4, inf }
 0x147   :  { %1625 = vperm.xlu1 %3269, %v1486_v46   ;;  %v1774_v9 = vmul.f32 %v269_v59, %v269_v59  ;;  %v1511_v36 = vrot.slane %v1489_v51, %v3490_v31  ;;  %v229_v13 = vsel %vm228_vm13, %v3659_v4, %v227_v52  ;;  %vm230_vm14 = vcmp.eq.f32.partialorder %v3659_v4, 0.0 }
 0x148   :  { %v1518_v0 = vrot.slane %v1490_v7, %v3490_v31  ;;  %v1519_v18 = vcombine.low %v1497_v63, %v1504_v2  ;;  %v231_v15 = vand.u32 2147483648, %v3659_v4  ;;  %v772_v19 = vrot.slane %v3665_v8, %v3464_v22 }
 0x149   :  { %v2212_v5 = vrot.slane %v1774_v9, %v3464_v22  ;;  %v2216_v29 = vrot.slane %v1774_v9, %v3467_v23  ;;  %v2220_v21 = vrot.slane %v1774_v9, %v3470_v24  ;;  %v2224_v53 = vrot.slane %v1774_v9, %v3473_v25 }
 0x14a   :  { %v2228_v40 = vrot.slane %v1774_v9, %v3476_v26  ;;  %v2232_v39 = vrot.slane %v1774_v9, %v3479_v27  ;;  %v2236_v11 = vrot.slane %v1774_v9, %v3482_v28  ;;  %v2240_v41 = vrot.slane %v1774_v9, %v3487_v30 }
 0x14b   :  { %v2942_v42 = vcombine.low %v2212_v5, %v2216_v29  ;;  %v2943_v17 = vcombine.low %v2220_v21, %v2224_v53  ;;  %v1520_v43 = vcombine.low %v1511_v36, %v1518_v0  ;;  %v1527_v50 = vrot.slane %v1519_v18, %v3490_v31 }
 0x14c   :  { %v2944_v49 = vcombine.low %v2228_v40, %v2232_v39  ;;  %v2945_v33 = vcombine.low %v2236_v11, %v2240_v41  ;;  %v232_v58 = vsel %vm230_vm14, %v231_v15, %v229_v13  ;;  %v776_v48 = vrot.slane %v3665_v8, %v3467_v23 }
 0x14d   :  { %v2952_v20 = vrot.slane %v2942_v42, %v3490_v31  ;;  %v2959_v35 = vrot.slane %v2943_v17, %v3490_v31  ;;  %v1534_v34 = vrot.slane %v1520_v43, %v3490_v31  ;;  %v254_v45 = vsub.f32 1.25, %v232_v58 }
 0x14e   :  { %v2966_v10 = vrot.slane %v2944_v49, %v3490_v31  ;;  %v2973_v37 = vrot.slane %v2945_v33, %v3490_v31  ;;  %v780_v32 = vrot.slane %v3665_v8, %v3470_v24  ;;  %v784_v4 = vrot.slane %v3665_v8, %v3473_v25 }
 0x14f   :  { %v2974_v60 = vcombine.low %v2952_v20, %v2959_v35  ;;  %v1535_v55 = vcombine.low %v1527_v50, %v1534_v34  ;;  %v270_v56 = vmax.f32 %v254_v45, 0.0  ;;  %v788_v62 = vrot.slane %v3665_v8, %v3476_v26 }
 0x150   :  { %v2975_v1 = vcombine.low %v2966_v10, %v2973_v37  ;;  %v792_v12 = vrot.slane %v3665_v8, %v3479_v27  ;;  %v796_v38 = vrot.slane %v3665_v8, %v3482_v28  ;;  %v800_v57 = vrot.slane %v3665_v8, %v3487_v30 }
 0x151   :  { %v2982_v3 = vrot.slane %v2974_v60, %v3490_v31  ;;  %1628 = vperm.xlu1 %3269, %v1535_v55   ;;  %v1775_v14 = vmul.f32 %v270_v56, %v270_v56  ;;  %v1536_v16 = vcombine.low %v772_v19, %v776_v48  ;;  %v1537_v44 = vcombine.low %v780_v32, %v784_v4 }
 0x152   :  { %v2989_v6 = vrot.slane %v2975_v1, %v3490_v31  ;;  %v1538_v61 = vcombine.low %v788_v62, %v792_v12  ;;  %v1539_v47 = vcombine.low %v796_v38, %v800_v57  ;;  %v234_v46 = vmul.f32 %v3741_v54, %v3665_v8 }
 0x153   :  { %v2244_v59 = vrot.slane %v1775_v14, %v3464_v22  ;;  %v2248_v51 = vrot.slane %v1775_v14, %v3467_v23  ;;  %v2252_v52 = vrot.slane %v1775_v14, %v3470_v24  ;;  %v2256_v7 = vrot.slane %v1775_v14, %v3473_v25 }
 0x154   :  { %v2990_v63 = vcombine.low %v2982_v3, %v2989_v6  ;;  %v2260_v2 = vrot.slane %v1775_v14, %v3476_v26  ;;  %v2264_v9 = vrot.slane %v1775_v14, %v3479_v27  ;;  %v2268_v36 = vrot.slane %v1775_v14, %v3482_v28 }
 0x155   :  { %v2272_v13 = vrot.slane %v1775_v14, %v3487_v30  ;;  %v2991_v0 = vcombine.low %v2244_v59, %v2248_v51  ;;  %v2992_v18 = vcombine.low %v2252_v52, %v2256_v7  ;;  %v1546_v54 = vrot.slane %v1536_v16, %v3490_v31 }
 0x156   :  { %3129 = vperm.xlu0 %3268, %v2990_v63   ;;  %v2993_v15 = vcombine.low %v2260_v2, %v2264_v9  ;;  %v1553_v19 = vrot.slane %v1537_v44, %v3490_v31  ;;  %v1560_v5 = vrot.slane %v1538_v61, %v3490_v31  ;;  %v1567_v29 = vrot.slane %v1539_v47, %v3490_v31  ;;  %v1587_v9 = vpop.permute.xlu0 %1586 }
 0x157   :  { %v2994_v21 = vcombine.low %v2268_v36, %v2272_v13  ;;  %v3001_v53 = vrot.slane %v2991_v0, %v3490_v31  ;;  %v3008_v40 = vrot.slane %v2992_v18, %v3490_v31  ;;  %vm235_vm15 = vcmp.eq.f32.partialorder %v3665_v8, inf }
 0x158   :  { %v3015_v39 = vrot.slane %v2993_v15, %v3490_v31  ;;  %v1568_v11 = vcombine.low %v1546_v54, %v1553_v19  ;;  %v1569_v41 = vcombine.low %v1560_v5, %v1567_v29  ;;  %v236_v42 = vsel %vm235_vm15, %v3665_v8, %v234_v46 }
 0x159   :  { %v3022_v17 = vrot.slane %v2994_v21, %v3490_v31  ;;  %v3023_v43 = vcombine.low %v3001_v53, %v3008_v40  ;;  %vm237_vm0 = vcmp.eq.f32.partialorder %v3665_v8, 0.0  ;;  %v238_v50 = vand.u32 2147483648, %v3665_v8 }
 0x15a   :  { %v1576_v49 = vrot.slane %v1568_v11, %v3490_v31  ;;  %v1583_v33 = vrot.slane %v1569_v41, %v3490_v31  ;;  %v3326_v47 = vmov 0.0   ;;  %v3103_v13 = vpop.permute.xlu0 %3102  ;;  %v4388_v29 = vlaneseq }
 0x15b   :  { %v3024_v58 = vcombine.low %v3015_v39, %v3022_v17  ;;  %v3031_v48 = vrot.slane %v3023_v43, %v3490_v31  ;;  %v239_v20 = vsel %vm237_vm0, %v238_v50, %v236_v42  ;;  %3247 = vst [vmem:[#allocation2] sm:$0xff] %v3326_v47  ;;  %v4389_v42 = vld [vmem:[#allocation5_spill] sm:$0xff]  ;;  %vm1644_vm1 = vcmask 130112  }
 0x15c   :  { %v1584_v35 = vcombine.low %v1576_v49, %v1583_v33  ;;  %v255_v34 = vsub.f32 1.25, %v239_v20  ;;  %v4290_v21 = vand.u32 127, %v4388_v29  ;;  %vm1651_vm2 = vcmask 195712  }
 0x15d   :  { %v3038_v45 = vrot.slane %v3024_v58, %v3490_v31  ;;  %vm1658_vm3 = vcmask 261312   ;;  %vm1665_vm4 = vcmask 326912   ;;  %vm1672_vm5 = vcmask 392512  }
 0x15e   :  { %1631 = vperm.xlu1 %3269, %v1584_v35   ;;  %v271_v10 = vmax.f32 %v255_v34, 0.0  ;;  %v3106_v18 = vpop.permute.xlu0 %3105  ;;  %v1639_v40 = vadd.s32 4294967288, %v4290_v21  ;;  %v1646_v39 = vadd.s32 4294967280, %v4290_v21  ;;  %v1653_v11 = vadd.s32 4294967272, %v4290_v21 }
 0x15f   :  { %v3039_v37 = vcombine.low %v3031_v48, %v3038_v45  ;;  %v1637_v49 = vsub.s32 %v4290_v21, %v4389_v42  ;;  %v1660_v48 = vadd.s32 4294967264, %v4290_v21  ;;  %vm1679_vm6 = vcmask 458112  }
 0x160   :  { %v1776_v32 = vmul.f32 %v271_v10, %v271_v10  ;;  %v1642_v17 = vsub.s32 %v1639_v40, %v4389_v42  ;;  %v1649_v43 = vsub.s32 %v1646_v39, %v4389_v42  ;;  %v1656_v33 = vsub.s32 %v1653_v11, %v4389_v42 }
 0x161   :  { %3132 = vperm.xlu0 %3268, %v3039_v37   ;;  %v1667_v10 = vadd.s32 4294967256, %v4290_v21  ;;  %v1695_v47 = vadd.s32 4294967224, %v4290_v21  ;;  %vm1686_vm7 = vcmask 523712   ;;  %v1716_v29 = vadd.s32 4294967200, %v4290_v21 }
 0x162   :  { %v2276_v4 = vrot.slane %v1776_v32, %v3464_v22  ;;  %v2280_v8 = vrot.slane %v1776_v32, %v3467_v23  ;;  %v2284_v60 = vrot.slane %v1776_v32, %v3470_v24  ;;  %v2288_v55 = vrot.slane %v1776_v32, %v3473_v25 }
 0x163   :  { %v2292_v56 = vrot.slane %v1776_v32, %v3476_v26  ;;  %v2296_v62 = vrot.slane %v1776_v32, %v3479_v27  ;;  %v2300_v1 = vrot.slane %v1776_v32, %v3482_v28  ;;  %v2304_v12 = vrot.slane %v1776_v32, %v3487_v30  ;;  %v4263_v26 = vpop.permute.xlu1 %1589 }
 0x164   :  { %v3040_v38 = vcombine.low %v2276_v4, %v2280_v8  ;;  %v3041_v57 = vcombine.low %v2284_v60, %v2288_v55  ;;  %v1663_v32 = vsub.s32 %v1660_v48, %v4389_v42  ;;  %v1674_v60 = vadd.s32 4294967248, %v4290_v21 }
 0x165   :  { %v3042_v3 = vcombine.low %v2292_v56, %v2296_v62  ;;  %v3043_v14 = vcombine.low %v2300_v1, %v2304_v12  ;;  %v1670_v56 = vsub.s32 %v1667_v10, %v4389_v42  ;;  %v1681_v12 = vadd.s32 4294967240, %v4290_v21 }
 0x166   :  { %v3050_v22 = vrot.slane %v3040_v38, %v3490_v31  ;;  %v3057_v23 = vrot.slane %v3041_v57, %v3490_v31  ;;  %v3159_v55 = vrot.slane %v3103_v13, %v1663_v32  ;;  %v1677_v57 = vsub.s32 %v1674_v60, %v4389_v42 }
 0x167   :  { %v3064_v24 = vrot.slane %v3042_v3, %v3490_v31  ;;  %v3071_v25 = vrot.slane %v3043_v14, %v3490_v31  ;;  %v4267_v6 = vpop.permute.xlu1 %1592  ;;  %v3164_v38 = vrot.slane %v3106_v18, %v1670_v56  ;;  %v1643_v14 = vrot.slane %v4263_v26, %v1642_v17 }
 0x168   :  { %v3072_v16 = vcombine.low %v3050_v22, %v3057_v23  ;;  %v1688_v22 = vadd.s32 4294967232, %v4290_v21  ;;  %vm1693_vm8 = vcmask 589312   ;;  %v1698_v40 = vsub.s32 %v1695_v47, %v4389_v42 }
 0x169   :  { %v3073_v27 = vcombine.low %v3064_v24, %v3071_v25  ;;  %v3109_v15 = vpop.permute.xlu0 %3108  ;;  %v1650_v24 = vrot.slane %v4267_v6, %v1649_v43  ;;  %v1684_v25 = vsub.s32 %v1681_v12, %v4389_v42  ;;  %v1702_v6 = vadd.s32 4294967216, %v4290_v21 }
 0x16a   :  { %v3080_v28 = vrot.slane %v3072_v16, %v3490_v31  ;;  %v3169_v23 = vrot.slane %v3109_v15, %v1677_v57  ;;  %v1638_v16 = vrot.slane %v1587_v9, %v1637_v49  ;;  %v1691_v18 = vsub.s32 %v1688_v22, %v4389_v42 }
 0x16b   :  { %v3087_v30 = vrot.slane %v3073_v27, %v3490_v31  ;;  %v4269_v61 = vpop.permute.xlu1 %1595  ;;  %v1709_v9 = vadd.s32 4294967208, %v4290_v21  ;;  %v1723_v39 = vadd.s32 4294967192, %v4290_v21  ;;  %vm1700_vm9 = vcmask 654912  }
 0x16c   :  { %v1657_v27 = vrot.slane %v4269_v61, %v1656_v33  ;;  %v1645_v26 = vsel %vm1644_vm1, %v1643_v14, %v1638_v16  ;;  %vm1707_vm10 = vcmask 720512   ;;  %vm1714_vm11 = vcmask 786112  }
 0x16d   :  { %v3088_v44 = vcombine.low %v3080_v28, %v3087_v30  ;;  %vm1721_vm12 = vcmask 851712   ;;  %vm1728_vm13 = vcmask 917312   ;;  %vm1735_vm14 = vcmask 982912  }
 0x16e   :  { %vm1742_vm15 = vcmask 1048512  }
 0x16f   :  { %3135 = vperm.xlu0 %3268, %v3088_v44   ;;  %v4271_v46 = vpop.permute.xlu1 %1598 }
 0x173   :  { %v4273_v59 = vpop.permute.xlu1 %1601 }
 0x175   :  { %v3112_v5 = vpop.permute.xlu0 %3111 }
 0x176   :  { %v3174_v13 = vrot.slane %v3112_v5, %v1684_v25 }
 0x177   :  { %v4275_v51 = vpop.permute.xlu1 %1604 }
 0x178   :  { %v1678_v11 = vrot.slane %v4275_v51, %v1677_v57 }
 0x17b   :  { %v4277_v52 = vpop.permute.xlu1 %1607 }
 0x17f   :  { %v4279_v7 = vpop.permute.xlu1 %1610 }
 0x180   :  { %v1692_v51 = vrot.slane %v4279_v7, %v1691_v18 }
 0x182   :  { %v4295_v41 = vpop.permute.xlu0 %3114 }
 0x183   :  { %v4281_v63 = vpop.permute.xlu1 %1613  ;;  %v3179_v5 = vrot.slane %v4295_v41, %v1691_v18  ;;  %v1712_v41 = vsub.s32 %v1709_v9, %v4389_v42  ;;  %v3236_v9 = vmul.u32 128, %v4389_v42 }
 0x187   :  { %v4283_v2 = vpop.permute.xlu1 %1616 }
 0x18b   :  { %v4285_v36 = vpop.permute.xlu1 %1619 }
 0x18e   :  { %v4303_v45 = vpop.permute.xlu0 %3117 }
 0x18f   :  { %v4287_v0 = vpop.permute.xlu1 %1622 }
 0x195   :  { %v3091_v54 = vpop.permute.xlu1 %3090 }
 0x196   :  { %v3140_v35 = vrot.slane %v3091_v54, %v1637_v49  ;;  %v1652_v54 = vsel %vm1651_vm2, %v1650_v24, %v1645_v26 }
 0x197   :  { %v1659_v15 = vsel %vm1658_vm3, %v1657_v27, %v1652_v54  ;;  %v272_v54 = vld [vmem:[%s4382_s2] sm:$0x1]  ;;  %s3327_s2 = smov [#allocation2]  }
 0x198   :  { %s3256_s22 = sshll.u32 %s3327_s2, 4  ;;  %s3257_s22 = int_to_ptr.vmem [resolvable:$true] %s3256_s22 }
 0x199   :  { %s3302_s23 = scalar_lea.vmem %s3257_s22, 128  ;;  %p3307_p1 = scmp.lt.s32.totalorder %s3257_s22, %s3257_s22 }
 0x19a   :  { %p3303_p0 = scmp.ne.s32.totalorder %s3257_s22, %s3302_s23  ;;  %p3308_p2 = scmp.lt.s32.totalorder %s3302_s23, %s3302_s23 }
 0x19b   :  { %v4312_v62 = vpop.permute.xlu0 %3120 }
 0x19c   :  { %p3309_p3 = por %p3308_p2, %p3307_p1 }
 0x19e   :  { %p3310_p4 = pnand %p3309_p3, %p3303_p0 }
 0x1a0   :  { %v3094_v19 = vpop.permute.xlu1 %3093 }
 0x1a1   :  { %v3144_v58 = vrot.slane %v3094_v19, %v1642_v17  ;;  %v1664_v19 = vrot.slane %v4271_v46, %v1663_v32  ;;  %v1705_v17 = vsub.s32 %v1702_v6, %v4389_v42  ;;  %v1730_v46 = vadd.s32 4294967184, %v4290_v21 }
 0x1a3   :  { %v3145_v37 = vsel %vm1644_vm1, %v3144_v58, %v3140_v35  ;;  %v1737_v58 = vadd.s32 4294967176, %v4290_v21  ;;  %v1666_v48 = vsel %vm1665_vm4, %v1664_v19, %v1659_v15  ;;  %v3189_v32 = vrot.slane %v4312_v62, %v1705_v17 }
 0x1a4   :  { %vm3243_vm1 = vcmask 1040384  }
 0x1a5   :  { %v1740_v60 = vsub.s32 %v1737_v58, %v4389_v42 }
 0x1ad   :  { %v3124_v28 = vpop.permute.xlu0 %3123 }
 0x1ae   :  { %v3194_v62 = vrot.slane %v3124_v28, %v1712_v41 }
 0x1b3   :  { %v3097_v53 = vpop.permute.xlu1 %3096 }
 0x1b4   :  { %v3149_v20 = vrot.slane %v3097_v53, %v1649_v43  ;;  %v1671_v53 = vrot.slane %v4273_v59, %v1670_v56  ;;  %v3184_v59 = vrot.slane %v4303_v45, %v1698_v40  ;;  %v1706_v45 = vrot.slane %v4283_v2, %v1705_v17 }
 0x1b6   :  { %v3150_v4 = vsel %vm1651_vm2, %v3149_v20, %v3145_v37  ;;  %v1719_v20 = vsub.s32 %v1716_v29, %v4389_v42  ;;  %v1673_v35 = vsel %vm1672_vm5, %v1671_v53, %v1666_v48  ;;  %v1760_v29 = vsub.f32 1.0, %v272_v54 }
 0x1b7   :  { %v1680_v37 = vsel %vm1679_vm6, %v1678_v11, %v1673_v35  ;;  %vm3248_vm2 = vcmask 0  }
 0x1b8   :  { %v3100_v50 = vpop.permute.xlu1 %3099 }
 0x1b9   :  { %v3154_v34 = vrot.slane %v3100_v50, %v1656_v33  ;;  %v1685_v33 = vrot.slane %v4277_v52, %v1684_v25  ;;  %v1726_v52 = vsub.s32 %v1723_v39, %v4389_v42 }
 0x1bb   :  { %v3155_v8 = vsel %vm1658_vm3, %v3154_v34, %v3150_v4  ;;  %v1699_v34 = vrot.slane %v4281_v63, %v1698_v40  ;;  %v1733_v4 = vsub.s32 %v1730_v46, %v4389_v42  ;;  %v1687_v7 = vsel %vm1686_vm7, %v1685_v33, %v1680_v37 }
 0x1bc   :  { %v3160_v1 = vsel %vm1665_vm4, %v3159_v55, %v3155_v8  ;;  %v1713_v8 = vrot.slane %v4285_v36, %v1712_v41  ;;  %v1694_v63 = vsel %vm1693_vm8, %v1692_v51, %v1687_v7  ;;  %v1720_v55 = vrot.slane %v4287_v0, %v1719_v20 }
 0x1bd   :  { %v3165_v3 = vsel %vm1672_vm5, %v3164_v38, %v3160_v1  ;;  %v1701_v2 = vsel %vm1700_vm9, %v1699_v34, %v1694_v63 }
 0x1be   :  { %v3170_v30 = vsel %vm1679_vm6, %v3169_v23, %v3165_v3  ;;  %v1708_v57 = vsel %vm1707_vm10, %v1706_v45, %v1701_v2 }
 0x1bf   :  { %v3175_v61 = vsel %vm1686_vm7, %v3174_v13, %v3170_v30  ;;  %v1715_v36 = vsel %vm1714_vm11, %v1713_v8, %v1708_v57 }
 0x1c0   :  { %v3180_v43 = vsel %vm1693_vm8, %v3179_v5, %v3175_v61  ;;  %v3127_v50 = vpop.permute.xlu0 %3126  ;;  %v1722_v23 = vsel %vm1721_vm12, %v1720_v55, %v1715_v36  ;;  %v3239_v5 = vadd.s32 %v3236_v9, %v4290_v21 }
 0x1c1   :  { %v3185_v10 = vsel %vm1700_vm9, %v3184_v59, %v3180_v43  ;;  %v3199_v24 = vrot.slane %v3127_v50, %v1719_v20 }
 0x1c2   :  { %v4324_v44 = vpop.permute.xlu1 %1625  ;;  %v3190_v56 = vsel %vm1707_vm10, %v3189_v32, %v3185_v10  ;;  %vm3240_vm0 = vcmp.lt.s32.totalorder %v3239_v5, 8 }
 0x1c3   :  { %v1727_v38 = vrot.slane %v4324_v44, %v1726_v52  ;;  %v3195_v14 = vsel %vm1714_vm11, %v3194_v62, %v3190_v56 }
 0x1c4   :  { %v3200_v25 = vsel %vm1721_vm12, %v3199_v24, %v3195_v14 }
 0x1c5   :  { %v1729_v0 = vsel %vm1728_vm13, %v1727_v38, %v1722_v23 }
 0x1cc   :  { %v1629_v49 = vpop.permute.xlu1 %1628 }
 0x1cd   :  { %v1734_v3 = vrot.slane %v1629_v49, %v1733_v4 }
 0x1cf   :  { %v1736_v16 = vsel %vm1735_vm14, %v1734_v3, %v1729_v0 }
 0x1d1   :  { %v3130_v1 = vpop.permute.xlu0 %3129 }
 0x1d2   :  { %v3204_v30 = vrot.slane %v3130_v1, %v1726_v52 }
 0x1d4   :  { %v3205_v28 = vsel %vm1728_vm13, %v3204_v30, %v3200_v25 }
 0x1d9   :  { %v1632_v12 = vpop.permute.xlu1 %1631 }
 0x1da   :  { %v1741_v22 = vrot.slane %v1632_v12, %v1740_v60 }
 0x1dc   :  { %v3133_v27 = vpop.permute.xlu0 %3132  ;;  %v1743_v47 = vsel %vm1742_vm15, %v1741_v22, %v1736_v16 }
 0x1dd   :  { %v3209_v13 = vrot.slane %v3133_v27, %v1733_v4  ;;  %v1750_v44 = vrot.slane %v1743_v47, %v3490_v31 }
 0x1df   :  { %v3210_v26 = vsel %vm1735_vm14, %v3209_v13, %v3205_v28  ;;  %v1757_v61 = vrot.slane %v1750_v44, %v3490_v31 }
 0x1e1   :  { %v1759_v53 = vmul.f32 %v1757_v61, %v272_v54 }
 0x1ea   :  { %v3136_v18 = vpop.permute.xlu0 %3135 }
 0x1eb   :  { %v3214_v6 = vrot.slane %v3136_v18, %v1740_v60 }
 0x1ed   :  { %v3215_v15 = vsel %vm1742_vm15, %v3214_v6, %v3210_v26 }
 0x1ee   :  { %v3222_v19 = vrot.slane %v3215_v15, %v3490_v31 }
 0x1f0   :  { %v3229_v40 = vrot.slane %v3222_v19, %v3490_v31 }
 0x1f2   :  { %v3231_v39 = vmul.f32 %v3229_v40, %v1760_v29 }
 0x1f4   :  { %v3232_v11 = vadd.f32 %v3231_v39, %v1759_v53 }
 0x1f6   :  { %v3241_v17 = vsel %vm3240_vm0, %v3232_v11, 0.0 }
 0x1f7   :  { %v3244_v43 = vsel %vm3243_vm1, %v3241_v17, 0.0 }
 0x1f8   :  { %3245 = vadd.xlane.f32.xlu1 %v3244_v43 }
 0x281   :  { %v3246_v42 = vpop.xlane.xlu1 %3245 }
 0x282   :  { %3249 = vst.msk [vmem:[#allocation2] sm:$0x1] %vm3248_vm2, %v3246_v42 }
 0x283   :  { %3313 = shalt.err (!%p3310_p4)
}
 0x284   :  { %3259 = dma.vmem_to_hbm [thread:$0]  %s3257_s22, 128, %s4383_s3, [#allocation3]  }
 0x285   :  { %3322 = dma.done.wait [#allocation3], 128  }
 0x286   :  { %3323 = vsyncadd [#allocation3], 4294967168 }
 0x287   :  { %3263 = vsyncpa [#allocation3], 1 }

</bundles_post_ra>
